<compile_context>
chip_gen: v7x
topology: tpu7x:2x2x1
jax: 0.10.0
libtpu: 0.0.40
codegen_flags: <defaults>
</compile_context>

<pallas_src>
import jax
import jax.numpy as jnp
from jax.experimental import pallas as pl
from jax.experimental.pallas import tpu as pltpu

# ---- small, module-consistent sizes --------------------------------------
BSZ = 2            # batch size seen by EncoderWrapper
NPASS = 2          # n_passages (FiD fold)
SEQ = 8            # passage_length
D = 32             # d_model
H = 4              # num_heads
DH = D // H        # d_head
DFF = 128          # d_ff (lane-dense: exactly 128 lanes)
B = BSZ * NPASS    # folded batch the encoder blocks see
BT = 2             # folded-batch tile per grid step  -> grid = B // BT = 2
VOCAB = 64
NUM_BUCKETS = 8
MAX_DIST = 32
NUM_LAYERS = 2
EPS = 1e-6


# ---------------------------------------------------------------------------
# Fused T5 encoder block kernel
# ---------------------------------------------------------------------------
def t5_block_kernel(x_ref, mask_ref, bias_ref,
                    ln1_ref, wqkv_ref, wo_ref,
                    ln2_ref, wi_ref, woff_ref,
                    o_ref):
    """One grid step = BT folded-batch sequences (BT*SEQ rows).

    x_ref:    [BT*SEQ, D]      f32 hidden states (batch folded into rows)
    mask_ref: [BT, 1, 1, SEQ]  f32 additive key mask (0 / -1e9, HF layout)
    bias_ref: [1, H, SEQ, SEQ] f32 T5 relative position bias (shared, resident)
    ln1/ln2:  [1, D]           f32 RMSNorm weights (f32: v5e VPU has no bf16)
    wqkv:     [D, 3D]          bf16 fused Q|K|V projection (pre-cast once)
    wo:       [D, D]           bf16 attention output projection
    wi:       [D, DFF]         bf16 FFN in-projection
    woff:     [DFF, D]         bf16 FFN out-projection
    o_ref:    [BT*SEQ, D]
    """
    R = BT * SEQ
    x = x_ref[...]                                           # [R, D] f32

    # ----------------- self-attention sub-layer -----------------
    # T5 LayerNorm (RMSNorm: no mean subtraction, no bias) — f32.
    var = jnp.mean(x * x, axis=-1, keepdims=True)
    xn = x * jax.lax.rsqrt(var + EPS) * ln1_ref[0]           # [R, D]

    # Fused QKV projection: one K=D MXU push, bf16 operands, f32 accumulation.
    qkv = jnp.dot(xn.astype(jnp.bfloat16), wqkv_ref[...],
                  preferred_element_type=jnp.float32)        # [R, 3D]
    qkv = qkv.astype(jnp.bfloat16)

    # Fold (head, batch) into ONE leading batch axis N = H*BT so scores and
    # context are each a single batched einsum (single-batch-dim dot_general,
    # the form Mosaic supports). At DH=8 the per-head lane slices are sub-vreg
    # plumbing, not real copies.
    def split_heads(off):
        parts = [qkv[:, off + h * DH: off + (h + 1) * DH].reshape(BT, SEQ, DH)
                 for h in range(H)]
        return jnp.concatenate(parts, axis=0)                # [H*BT, SEQ, DH]

    qn, kn, vn = split_heads(0), split_heads(D), split_heads(2 * D)

    # Scores for all (head, batch) pairs at once (T5: no 1/sqrt(d) scaling).
    s = jnp.einsum('nqd,nkd->nqk', qn, kn,
                   preferred_element_type=jnp.float32)       # [H*BT, S, S]

    # bias + additive mask combined ONCE (no per-head re-broadcast).
    add_mask = mask_ref[...].reshape(BT, 1, SEQ)             # [BT, 1, S]
    s = (s.reshape(H, BT, SEQ, SEQ)
         + bias_ref[0][:, None, :, :]                        # [H, 1, S, S]
         + add_mask[None, :, :, :])                          # [1, BT, 1, S]

    # Softmax in f32; reciprocal runs on the EUP slot.
    m = jnp.max(s, axis=-1, keepdims=True)
    p = jnp.exp(s - m)
    p = p * pl.reciprocal(jnp.sum(p, axis=-1, keepdims=True), approx=True)

    ctx = jnp.einsum('nqk,nkd->nqd',
                     p.reshape(H * BT, SEQ, SEQ).astype(jnp.bfloat16), vn,
                     preferred_element_type=jnp.float32)     # [H*BT, S, DH]

    # Re-assemble heads along lanes (sub-vreg concat) and run ONE K=D output
    # projection instead of H pushes with K=DH.
    ctx = ctx.reshape(H, R, DH)
    ctx_cat = jnp.concatenate([ctx[h] for h in range(H)], axis=-1)   # [R, D]
    attn = jnp.dot(ctx_cat.astype(jnp.bfloat16), wo_ref[...],
                   preferred_element_type=jnp.float32)       # [R, D]
    h1 = x + attn                                            # residual (f32)

    # ----------------- FFN sub-layer (DenseReluDense) -----------------
    var2 = jnp.mean(h1 * h1, axis=-1, keepdims=True)
    hn = h1 * jax.lax.rsqrt(var2 + EPS) * ln2_ref[0]
    ff = jnp.dot(hn.astype(jnp.bfloat16), wi_ref[...],
                 preferred_element_type=jnp.float32)         # [R, DFF]
    ff = jnp.maximum(ff, 0.0)                                # ReLU, f32
    ff_out = jnp.dot(ff.astype(jnp.bfloat16), woff_ref[...],
                     preferred_element_type=jnp.float32)     # [R, D]

    # NOTE: D=32 (<128 lanes) -> masked stores; at real T5 widths (D>=512)
    # stores become lane-dense for free.
    o_ref[...] = (h1 + ff_out).astype(o_ref.dtype)


def t5_block_pallas(hidden_states, attention_mask, position_bias, fused):
    """One fused T5 encoder block as a single pallas_call."""
    ln1, wqkv, wo, ln2, wi, woff = fused
    assert hidden_states.shape == (B, SEQ, D), hidden_states.shape
    assert attention_mask.shape == (B, 1, 1, SEQ), attention_mask.shape
    assert position_bias.shape == (1, H, SEQ, SEQ), position_bias.shape

    x2d = hidden_states.reshape(B * SEQ, D)
    grid = B // BT   # "parallel": v7x megacore can shard the steps across TCs.

    # TODO(synk): at real T5 sizes (H=16, S~2k) the [1,H,S,S] bias cannot stay
    # VMEM-resident (256 MiB > 64 MiB on v7x): tile it over (q, kv) blocks with
    # a flash-style online softmax, or regenerate it in-kernel from the small
    # [num_buckets, H] table. When scaling up, the constant-index weight/bias
    # specs should also be single-buffered (pipeline_mode=pl.Buffered(1)).
    out2d = pl.pallas_call(
        t5_block_kernel,
        out_shape=jax.ShapeDtypeStruct((B * SEQ, D), hidden_states.dtype),
        grid_spec=pltpu.PrefetchScalarGridSpec(
            num_scalar_prefetch=0,
            grid=(grid,),
            in_specs=[
                pl.BlockSpec((BT * SEQ, D), lambda i: (i, 0)),          # hidden
                pl.BlockSpec((BT, 1, 1, SEQ), lambda i: (i, 0, 0, 0)),  # add. mask
                pl.BlockSpec((1, H, SEQ, SEQ), lambda i: (0, 0, 0, 0)), # pos bias
                pl.BlockSpec((1, D), lambda i: (0, 0)),                 # ln1 (f32)
                pl.BlockSpec((D, 3 * D), lambda i: (0, 0)),             # Wqkv bf16
                pl.BlockSpec((D, D), lambda i: (0, 0)),                 # Wo   bf16
                pl.BlockSpec((1, D), lambda i: (0, 0)),                 # ln2 (f32)
                pl.BlockSpec((D, DFF), lambda i: (0, 0)),               # Wi   bf16
                pl.BlockSpec((DFF, D), lambda i: (0, 0)),               # Woff bf16
            ],
            out_specs=pl.BlockSpec((BT * SEQ, D), lambda i: (i, 0)),
        ),
        compiler_params=pltpu.CompilerParams(
            dimension_semantics=("parallel",)),
    )(x2d, attention_mask, position_bias, ln1, wqkv, wo, ln2, wi, woff)
    return out2d.reshape(B, SEQ, D)


# ---------------------------------------------------------------------------
# T5 relative position bias (plain JAX, computed once per forward)
# ---------------------------------------------------------------------------
def t5_relative_position_bucket(rel_pos, num_buckets=NUM_BUCKETS,
                                max_distance=MAX_DIST):
    num_buckets //= 2                       # bidirectional
    ret = (rel_pos > 0).astype(jnp.int32) * num_buckets
    n = jnp.abs(rel_pos)
    max_exact = num_buckets // 2
    is_small = n < max_exact
    val_if_large = max_exact + (
        jnp.log(n.astype(jnp.float32) / max_exact + 1e-6)
        / jnp.log(max_distance / max_exact) * (num_buckets - max_exact)
    ).astype(jnp.int32)
    val_if_large = jnp.minimum(val_if_large, num_buckets - 1)
    return ret + jnp.where(is_small, n, val_if_large)


def compute_position_bias(rel_table, seq_len):
    ctx = jnp.arange(seq_len)[:, None]
    mem = jnp.arange(seq_len)[None, :]
    buckets = t5_relative_position_bucket(mem - ctx)          # [S, S]
    return rel_table[buckets].transpose(2, 0, 1)[None]        # [1, H, S, S]


# ---------------------------------------------------------------------------
# CheckpointWrapper / EncoderWrapper equivalents
# ---------------------------------------------------------------------------
class CheckpointWrapperPallas:
    """CheckpointWrapper: forwards to the wrapped block; when use_checkpoint and
    training, reruns it under jax.checkpoint (remat). The PyTorch None <->
    empty-tensor swap is pure glue and unnecessary under jax.checkpoint."""

    def __init__(self, block_params, use_checkpoint=False):
        ln1, wq, wk, wv, wo, ln2, wi, woff = block_params
        # Fuse Q|K|V and pre-cast every MXU weight to bf16 ONCE (halves weight
        # DMA bytes + VMEM residency, removes per-call VPU casts). RMSNorm
        # weights stay f32 (elementwise path; v5e has no bf16 VPU).
        self.fused = (
            ln1.reshape(1, D).astype(jnp.float32),
            jnp.concatenate([wq, wk, wv], axis=1).astype(jnp.bfloat16),
            wo.astype(jnp.bfloat16),
            ln2.reshape(1, D).astype(jnp.float32),
            wi.astype(jnp.bfloat16),
            woff.astype(jnp.bfloat16),
        )
        self.use_checkpoint = use_checkpoint
        self.training = False

    def _module(self, hidden_states, attention_mask, position_bias):
        out = t5_block_pallas(hidden_states, attention_mask, position_bias,
                              self.fused)
        return (out, position_bias)   # T5 block returns (hidden, position_bias)

    def __call__(self, hidden_states, attention_mask, position_bias):
        if self.use_checkpoint and self.training:
            fn = jax.checkpoint(self._module)
        else:
            fn = self._module
        return fn(hidden_states, attention_mask, position_bias)


class EncoderWrapperPallas:
    """EncoderWrapper (Fusion-in-Decoder): fold [bsz, n_passages*plen] ->
    [bsz*n_passages, plen], run the checkpoint-wrapped encoder blocks, then
    concatenate passages back to [bsz, n_passages*plen, d_model]."""

    def __init__(self, params, n_passages, use_checkpoint=False):
        emb, rel_table, block_params, final_ln = params
        self.n_passages = n_passages
        self.embedding = emb
        self.rel_table = rel_table
        self.final_ln = final_ln
        # apply_checkpoint_wrapper: wrap every block.
        self.block = [CheckpointWrapperPallas(p, use_checkpoint)
                      for p in block_params]

    def __call__(self, input_ids, attention_mask):
        bsz, total_length = input_ids.shape
        plen = total_length // self.n_passages
        ids = input_ids.reshape(bsz * self.n_passages, plen)
        mask = attention_mask.reshape(bsz * self.n_passages, plen).astype(jnp.float32)

        # TODO(synk): token-embedding gather kept in plain JAX (no win from a
        # Pallas gather at this size).
        h = self.embedding[ids]                                    # [B, S, D]
        ext_mask = ((1.0 - mask) * -1e9).reshape(-1, 1, 1, plen)   # HF additive
        pos_bias = compute_position_bias(self.rel_table, plen)     # [1, H, S, S]

        for blk in self.block:
            h, pos_bias = blk(h, ext_mask, pos_bias)

        # TODO(synk): final encoder RMSNorm kept in plain JAX; fold into the
        # last block's kernel when fusing more layers per pallas_call.
        h = h * jax.lax.rsqrt(jnp.mean(h * h, axis=-1, keepdims=True) + EPS) * self.final_ln

        # FiD: concatenate passages back along the sequence axis.
        return h.reshape(bsz, self.n_passages * plen, -1)


# ---------------------------------------------------------------------------
# Pure-JAX f32 reference
# ---------------------------------------------------------------------------
def ref_block(h, ext_mask, pos_bias, p):
    ln1, wq, wk, wv, wo, ln2, wi, woff = p
    xn = h * jax.lax.rsqrt(jnp.mean(h * h, -1, keepdims=True) + EPS) * ln1

    def split(w):
        return (xn @ w).reshape(h.shape[0], SEQ, H, DH).transpose(0, 2, 1, 3)

    q, k, v = split(wq), split(wk), split(wv)
    s = jnp.einsum('bhqd,bhkd->bhqk', q, k) + pos_bias + ext_mask
    pr = jax.nn.softmax(s, axis=-1)
    ctx = jnp.einsum('bhqk,bhkd->bhqd', pr, v).transpose(0, 2, 1, 3)
    ctx = ctx.reshape(h.shape[0], SEQ, D)
    h1 = h + ctx @ wo
    hn = h1 * jax.lax.rsqrt(jnp.mean(h1 * h1, -1, keepdims=True) + EPS) * ln2
    return h1 + jnp.maximum(hn @ wi, 0.0) @ woff


def ref_encoder(input_ids, attention_mask, params, n_passages):
    emb, rel_table, block_params, final_ln = params
    bsz, total_length = input_ids.shape
    plen = total_length // n_passages
    ids = input_ids.reshape(bsz * n_passages, plen)
    mask = attention_mask.reshape(bsz * n_passages, plen).astype(jnp.float32)
    h = emb[ids]
    ext_mask = ((1.0 - mask) * -1e9).reshape(-1, 1, 1, plen)
    pos_bias = compute_position_bias(rel_table, plen)
    for p in block_params:
        h = ref_block(h, ext_mask, pos_bias, p)
    h = h * jax.lax.rsqrt(jnp.mean(h * h, -1, keepdims=True) + EPS) * final_ln
    return h.reshape(bsz, n_passages * plen, -1)


def init_params(key):
    ks = jax.random.split(key, 2 + NUM_LAYERS)
    emb = jax.random.normal(ks[0], (VOCAB, D), jnp.float32)
    rel_table = 0.1 * jax.random.normal(ks[1], (NUM_BUCKETS, H), jnp.float32)
    final_ln = jnp.ones((D,), jnp.float32)
    blocks = []
    for layer in range(NUM_LAYERS):
        kb = jax.random.split(ks[2 + layer], 6)
        blocks.append((
            jnp.ones((D,), jnp.float32),                              # ln1
            0.02 * jax.random.normal(kb[0], (D, D), jnp.float32),     # wq
            0.02 * jax.random.normal(kb[1], (D, D), jnp.float32),     # wk
            0.02 * jax.random.normal(kb[2], (D, D), jnp.float32),     # wv
            0.02 * jax.random.normal(kb[3], (D, D), jnp.float32),     # wo
            jnp.ones((D,), jnp.float32),                              # ln2
            0.02 * jax.random.normal(kb[4], (D, DFF), jnp.float32),   # wi
            0.02 * jax.random.normal(kb[5], (DFF, D), jnp.float32),   # wo_ff
        ))
    return emb, rel_table, blocks, final_ln


if __name__ == "__main__":
    key = jax.random.PRNGKey(0)
    kp, ki = jax.random.split(key)
    params = init_params(kp)

    input_ids = jax.random.randint(ki, (BSZ, NPASS * SEQ), 0, VOCAB,
                                   dtype=jnp.int32)
    attention_mask = jnp.ones((BSZ, NPASS * SEQ), jnp.int32)
    attention_mask = attention_mask.at[1, -2:].set(0).at[0, 7].set(0)  # padding

    encoder = EncoderWrapperPallas(params, n_passages=NPASS, use_checkpoint=False)
    out = jax.block_until_ready(encoder(input_ids, attention_mask))

    ref = ref_encoder(input_ids, attention_mask, params, NPASS)
    assert out.shape == (BSZ, NPASS * SEQ, D) and out.dtype == jnp.float32
    err = float(jnp.max(jnp.abs(out - ref)))
    # bf16 MXU operands + approx reciprocal give ~1e-3-level deviation vs f32.
    assert err < 5e-3, f"max abs err vs f32 reference: {err}"
    print("KERNEL_OK")
</pallas_src>

<mosaic_0001>
module attributes {stable_mosaic.version = 11 : i64} {
  func.func @t5_block_kernel(%arg0: i32, %arg1: memref<16x32xf32, #tpu.memory_space<vmem>>, %arg2: memref<2x1x1x8xf32, #tpu.memory_space<vmem>>, %arg3: memref<1x4x8x8xf32, #tpu.memory_space<vmem>>, %arg4: memref<1x32xf32, #tpu.memory_space<vmem>>, %arg5: memref<32x96xbf16, #tpu.memory_space<vmem>>, %arg6: memref<32x32xbf16, #tpu.memory_space<vmem>>, %arg7: memref<1x32xf32, #tpu.memory_space<vmem>>, %arg8: memref<32x128xbf16, #tpu.memory_space<vmem>>, %arg9: memref<128x32xbf16, #tpu.memory_space<vmem>>, %arg10: memref<16x32xf32, #tpu.memory_space<vmem>>) attributes {dimension_semantics = [#tpu.dimension_semantics<parallel>], iteration_bounds = array<i64: 2>, scalar_prefetch = 0 : i64, scratch_operands = 0 : i64, tpu.core_type = #tpu.core_type<tc>, window_params = [{transform_indices = @transform_0, window_bounds = array<i64: 16, 32>}, {transform_indices = @transform_1, window_bounds = array<i64: 2, 1, 1, 8>}, {pipeline_mode = #tpu.pipeline_mode<synchronous>, transform_indices = @transform_2, window_bounds = array<i64: 1, 4, 8, 8>}, {pipeline_mode = #tpu.pipeline_mode<synchronous>, transform_indices = @transform_3, window_bounds = array<i64: 1, 32>}, {pipeline_mode = #tpu.pipeline_mode<synchronous>, transform_indices = @transform_4, window_bounds = array<i64: 32, 96>}, {pipeline_mode = #tpu.pipeline_mode<synchronous>, transform_indices = @transform_5, window_bounds = array<i64: 32, 32>}, {pipeline_mode = #tpu.pipeline_mode<synchronous>, transform_indices = @transform_6, window_bounds = array<i64: 1, 32>}, {pipeline_mode = #tpu.pipeline_mode<synchronous>, transform_indices = @transform_7, window_bounds = array<i64: 32, 128>}, {pipeline_mode = #tpu.pipeline_mode<synchronous>, transform_indices = @transform_8, window_bounds = array<i64: 128, 32>}, {transform_indices = @transform_9, window_bounds = array<i64: 16, 32>}]} {
    %c0 = arith.constant 0 : index
    %c0_0 = arith.constant 0 : index
    %0 = vector.load %arg1[%c0, %c0_0] : memref<16x32xf32, #tpu.memory_space<vmem>>, vector<16x32xf32>
    %1 = arith.mulf %0, %0 : vector<16x32xf32>
    %cst = arith.constant dense<0.000000e+00> : vector<16xf32>
    %2 = vector.multi_reduction <add>, %1, %cst [1] : vector<16x32xf32> to vector<16xf32>
    %3 = vector.shape_cast %2 : vector<16xf32> to vector<16x1xf32>
    %cst_1 = arith.constant 3.200000e+01 : f32
    %4 = vector.broadcast %cst_1 : f32 to vector<16x1xf32>
    %5 = arith.divf %3, %4 : vector<16x1xf32>
    %cst_2 = arith.constant 9.99999997E-7 : f32
    %6 = vector.broadcast %cst_2 : f32 to vector<16x1xf32>
    %7 = arith.addf %5, %6 : vector<16x1xf32>
    %8 = math.rsqrt %7 : vector<16x1xf32>
    %9 = vector.broadcast %8 : vector<16x1xf32> to vector<16x32xf32>
    %10 = arith.mulf %0, %9 : vector<16x32xf32>
    %c0_3 = arith.constant 0 : index
    %c0_4 = arith.constant 0 : index
    %11 = vector.load %arg4[%c0_3, %c0_4] : memref<1x32xf32, #tpu.memory_space<vmem>>, vector<1x32xf32>
    %12 = vector.shape_cast %11 : vector<1x32xf32> to vector<32xf32>
    %13 = vector.shape_cast %12 : vector<32xf32> to vector<1x32xf32>
    %14 = vector.broadcast %13 : vector<1x32xf32> to vector<16x32xf32>
    %15 = arith.mulf %10, %14 : vector<16x32xf32>
    %16 = arith.truncf %15 : vector<16x32xf32> to vector<16x32xbf16>
    %c0_5 = arith.constant 0 : index
    %c0_6 = arith.constant 0 : index
    %17 = vector.load %arg5[%c0_5, %c0_6] : memref<32x96xbf16, #tpu.memory_space<vmem>>, vector<32x96xbf16>
    %cst_7 = arith.constant dense<0.000000e+00> : vector<16x96xf32>
    %18 = tpu.matmul %16, %17, %cst_7 {dimension_numbers = #tpu.dot_dimension_numbers<[1], [0], [0], [1], [0, 0, 1, 1], [], []>} : vector<16x32xbf16>, vector<32x96xbf16>, vector<16x96xf32> -> vector<16x96xf32>
    %19 = arith.truncf %18 : vector<16x96xf32> to vector<16x96xbf16>
    %20 = vector.extract_strided_slice %19 {offsets = [0, 0], sizes = [16, 8], strides = [1, 1]} : vector<16x96xbf16> to vector<16x8xbf16>
    %21 = vector.shape_cast %20 : vector<16x8xbf16> to vector<2x8x8xbf16>
    %22 = vector.extract_strided_slice %19 {offsets = [0, 8], sizes = [16, 8], strides = [1, 1]} : vector<16x96xbf16> to vector<16x8xbf16>
    %23 = vector.shape_cast %22 : vector<16x8xbf16> to vector<2x8x8xbf16>
    %24 = vector.extract_strided_slice %19 {offsets = [0, 16], sizes = [16, 8], strides = [1, 1]} : vector<16x96xbf16> to vector<16x8xbf16>
    %25 = vector.shape_cast %24 : vector<16x8xbf16> to vector<2x8x8xbf16>
    %26 = vector.extract_strided_slice %19 {offsets = [0, 24], sizes = [16, 8], strides = [1, 1]} : vector<16x96xbf16> to vector<16x8xbf16>
    %27 = vector.shape_cast %26 : vector<16x8xbf16> to vector<2x8x8xbf16>
    %28 = tpu.concatenate %21, %23, %25, %27 in 0 : vector<2x8x8xbf16>, vector<2x8x8xbf16>, vector<2x8x8xbf16>, vector<2x8x8xbf16> -> vector<8x8x8xbf16>
    %29 = vector.extract_strided_slice %19 {offsets = [0, 32], sizes = [16, 8], strides = [1, 1]} : vector<16x96xbf16> to vector<16x8xbf16>
    %30 = vector.shape_cast %29 : vector<16x8xbf16> to vector<2x8x8xbf16>
    %31 = vector.extract_strided_slice %19 {offsets = [0, 40], sizes = [16, 8], strides = [1, 1]} : vector<16x96xbf16> to vector<16x8xbf16>
    %32 = vector.shape_cast %31 : vector<16x8xbf16> to vector<2x8x8xbf16>
    %33 = vector.extract_strided_slice %19 {offsets = [0, 48], sizes = [16, 8], strides = [1, 1]} : vector<16x96xbf16> to vector<16x8xbf16>
    %34 = vector.shape_cast %33 : vector<16x8xbf16> to vector<2x8x8xbf16>
    %35 = vector.extract_strided_slice %19 {offsets = [0, 56], sizes = [16, 8], strides = [1, 1]} : vector<16x96xbf16> to vector<16x8xbf16>
    %36 = vector.shape_cast %35 : vector<16x8xbf16> to vector<2x8x8xbf16>
    %37 = tpu.concatenate %30, %32, %34, %36 in 0 : vector<2x8x8xbf16>, vector<2x8x8xbf16>, vector<2x8x8xbf16>, vector<2x8x8xbf16> -> vector<8x8x8xbf16>
    %38 = vector.extract_strided_slice %19 {offsets = [0, 64], sizes = [16, 8], strides = [1, 1]} : vector<16x96xbf16> to vector<16x8xbf16>
    %39 = vector.shape_cast %38 : vector<16x8xbf16> to vector<2x8x8xbf16>
    %40 = vector.extract_strided_slice %19 {offsets = [0, 72], sizes = [16, 8], strides = [1, 1]} : vector<16x96xbf16> to vector<16x8xbf16>
    %41 = vector.shape_cast %40 : vector<16x8xbf16> to vector<2x8x8xbf16>
    %42 = vector.extract_strided_slice %19 {offsets = [0, 80], sizes = [16, 8], strides = [1, 1]} : vector<16x96xbf16> to vector<16x8xbf16>
    %43 = vector.shape_cast %42 : vector<16x8xbf16> to vector<2x8x8xbf16>
    %44 = vector.extract_strided_slice %19 {offsets = [0, 88], sizes = [16, 8], strides = [1, 1]} : vector<16x96xbf16> to vector<16x8xbf16>
    %45 = vector.shape_cast %44 : vector<16x8xbf16> to vector<2x8x8xbf16>
    %46 = tpu.concatenate %39, %41, %43, %45 in 0 : vector<2x8x8xbf16>, vector<2x8x8xbf16>, vector<2x8x8xbf16>, vector<2x8x8xbf16> -> vector<8x8x8xbf16>
    "tpu.trace_start"() <{level = 10 : i32, message = "nqd,nkd->nqk"}> : () -> ()
    %cst_8 = arith.constant dense<0.000000e+00> : vector<8x8x8xf32>
    %47 = tpu.matmul %28, %37, %cst_8 {dimension_numbers = #tpu.dot_dimension_numbers<[2], [2], [1], [1], [0, 0, 0, 1, 1, 1], [0], [0]>} : vector<8x8x8xbf16>, vector<8x8x8xbf16>, vector<8x8x8xf32> -> vector<8x8x8xf32>
    "tpu.trace_stop"() : () -> ()
    %c0_9 = arith.constant 0 : index
    %c0_10 = arith.constant 0 : index
    %c0_11 = arith.constant 0 : index
    %c0_12 = arith.constant 0 : index
    %48 = vector.load %arg2[%c0_9, %c0_10, %c0_11, %c0_12] : memref<2x1x1x8xf32, #tpu.memory_space<vmem>>, vector<2x1x1x8xf32>
    %49 = vector.shape_cast %48 : vector<2x1x1x8xf32> to vector<2x1x8xf32>
    %50 = vector.shape_cast %47 : vector<8x8x8xf32> to vector<4x2x8x8xf32>
    %c0_13 = arith.constant 0 : index
    %c0_14 = arith.constant 0 : index
    %c0_15 = arith.constant 0 : index
    %c0_16 = arith.constant 0 : index
    %51 = vector.load %arg3[%c0_13, %c0_14, %c0_15, %c0_16] : memref<1x4x8x8xf32, #tpu.memory_space<vmem>>, vector<1x4x8x8xf32>
    %52 = vector.shape_cast %51 : vector<1x4x8x8xf32> to vector<4x8x8xf32>
    %53 = vector.shape_cast %52 : vector<4x8x8xf32> to vector<4x1x8x8xf32>
    %54 = vector.broadcast %53 : vector<4x1x8x8xf32> to vector<4x2x8x8xf32>
    %55 = arith.addf %50, %54 : vector<4x2x8x8xf32>
    %56 = vector.shape_cast %49 : vector<2x1x8xf32> to vector<1x2x1x8xf32>
    %57 = vector.broadcast %56 : vector<1x2x1x8xf32> to vector<4x2x8x8xf32>
    %58 = arith.addf %55, %57 : vector<4x2x8x8xf32>
    %cst_17 = arith.constant dense<0xFF800000> : vector<4x2x8xf32>
    %59 = vector.multi_reduction <maximumf>, %58, %cst_17 [3] : vector<4x2x8x8xf32> to vector<4x2x8xf32>
    %60 = vector.shape_cast %59 : vector<4x2x8xf32> to vector<4x2x8x1xf32>
    %61 = vector.broadcast %60 : vector<4x2x8x1xf32> to vector<4x2x8x8xf32>
    %62 = arith.subf %58, %61 : vector<4x2x8x8xf32>
    %63 = math.exp %62 : vector<4x2x8x8xf32>
    %cst_18 = arith.constant dense<0.000000e+00> : vector<4x2x8xf32>
    %64 = vector.multi_reduction <add>, %63, %cst_18 [3] : vector<4x2x8x8xf32> to vector<4x2x8xf32>
    %65 = vector.shape_cast %64 : vector<4x2x8xf32> to vector<4x2x8x1xf32>
    %66 = tpu.reciprocal %65 {approx = true} : vector<4x2x8x1xf32> -> vector<4x2x8x1xf32>
    %67 = vector.broadcast %66 : vector<4x2x8x1xf32> to vector<4x2x8x8xf32>
    %68 = arith.mulf %63, %67 : vector<4x2x8x8xf32>
    %69 = vector.shape_cast %68 : vector<4x2x8x8xf32> to vector<8x8x8xf32>
    %70 = arith.truncf %69 : vector<8x8x8xf32> to vector<8x8x8xbf16>
    "tpu.trace_start"() <{level = 10 : i32, message = "nqk,nkd->nqd"}> : () -> ()
    %cst_19 = arith.constant dense<0.000000e+00> : vector<8x8x8xf32>
    %71 = tpu.matmul %70, %46, %cst_19 {dimension_numbers = #tpu.dot_dimension_numbers<[2], [1], [1], [2], [0, 0, 0, 1, 1, 2], [0], [0]>} : vector<8x8x8xbf16>, vector<8x8x8xbf16>, vector<8x8x8xf32> -> vector<8x8x8xf32>
    "tpu.trace_stop"() : () -> ()
    %72 = vector.shape_cast %71 : vector<8x8x8xf32> to vector<4x16x8xf32>
    %73 = vector.extract_strided_slice %72 {offsets = [0, 0, 0], sizes = [1, 16, 8], strides = [1, 1, 1]} : vector<4x16x8xf32> to vector<1x16x8xf32>
    %74 = vector.shape_cast %73 : vector<1x16x8xf32> to vector<16x8xf32>
    %75 = vector.extract_strided_slice %72 {offsets = [1, 0, 0], sizes = [1, 16, 8], strides = [1, 1, 1]} : vector<4x16x8xf32> to vector<1x16x8xf32>
    %76 = vector.shape_cast %75 : vector<1x16x8xf32> to vector<16x8xf32>
    %77 = vector.extract_strided_slice %72 {offsets = [2, 0, 0], sizes = [1, 16, 8], strides = [1, 1, 1]} : vector<4x16x8xf32> to vector<1x16x8xf32>
    %78 = vector.shape_cast %77 : vector<1x16x8xf32> to vector<16x8xf32>
    %79 = vector.extract_strided_slice %72 {offsets = [3, 0, 0], sizes = [1, 16, 8], strides = [1, 1, 1]} : vector<4x16x8xf32> to vector<1x16x8xf32>
    %80 = vector.shape_cast %79 : vector<1x16x8xf32> to vector<16x8xf32>
    %81 = tpu.concatenate %74, %76, %78, %80 in 1 : vector<16x8xf32>, vector<16x8xf32>, vector<16x8xf32>, vector<16x8xf32> -> vector<16x32xf32>
    %82 = arith.truncf %81 : vector<16x32xf32> to vector<16x32xbf16>
    %c0_20 = arith.constant 0 : index
    %c0_21 = arith.constant 0 : index
    %83 = vector.load %arg6[%c0_20, %c0_21] : memref<32x32xbf16, #tpu.memory_space<vmem>>, vector<32x32xbf16>
    %cst_22 = arith.constant dense<0.000000e+00> : vector<16x32xf32>
    %84 = tpu.matmul %82, %83, %cst_22 {dimension_numbers = #tpu.dot_dimension_numbers<[1], [0], [0], [1], [0, 0, 1, 1], [], []>} : vector<16x32xbf16>, vector<32x32xbf16>, vector<16x32xf32> -> vector<16x32xf32>
    %85 = arith.addf %0, %84 : vector<16x32xf32>
    %86 = arith.mulf %85, %85 : vector<16x32xf32>
    %cst_23 = arith.constant dense<0.000000e+00> : vector<16xf32>
    %87 = vector.multi_reduction <add>, %86, %cst_23 [1] : vector<16x32xf32> to vector<16xf32>
    %88 = vector.shape_cast %87 : vector<16xf32> to vector<16x1xf32>
    %cst_24 = arith.constant 3.200000e+01 : f32
    %89 = vector.broadcast %cst_24 : f32 to vector<16x1xf32>
    %90 = arith.divf %88, %89 : vector<16x1xf32>
    %cst_25 = arith.constant 9.99999997E-7 : f32
    %91 = vector.broadcast %cst_25 : f32 to vector<16x1xf32>
    %92 = arith.addf %90, %91 : vector<16x1xf32>
    %93 = math.rsqrt %92 : vector<16x1xf32>
    %94 = vector.broadcast %93 : vector<16x1xf32> to vector<16x32xf32>
    %95 = arith.mulf %85, %94 : vector<16x32xf32>
    %c0_26 = arith.constant 0 : index
    %c0_27 = arith.constant 0 : index
    %96 = vector.load %arg7[%c0_26, %c0_27] : memref<1x32xf32, #tpu.memory_space<vmem>>, vector<1x32xf32>
    %97 = vector.shape_cast %96 : vector<1x32xf32> to vector<32xf32>
    %98 = vector.shape_cast %97 : vector<32xf32> to vector<1x32xf32>
    %99 = vector.broadcast %98 : vector<1x32xf32> to vector<16x32xf32>
    %100 = arith.mulf %95, %99 : vector<16x32xf32>
    %101 = arith.truncf %100 : vector<16x32xf32> to vector<16x32xbf16>
    %c0_28 = arith.constant 0 : index
    %c0_29 = arith.constant 0 : index
    %102 = vector.load %arg8[%c0_28, %c0_29] : memref<32x128xbf16, #tpu.memory_space<vmem>>, vector<32x128xbf16>
    %cst_30 = arith.constant dense<0.000000e+00> : vector<16x128xf32>
    %103 = tpu.matmul %101, %102, %cst_30 {dimension_numbers = #tpu.dot_dimension_numbers<[1], [0], [0], [1], [0, 0, 1, 1], [], []>} : vector<16x32xbf16>, vector<32x128xbf16>, vector<16x128xf32> -> vector<16x128xf32>
    %cst_31 = arith.constant 0.000000e+00 : f32
    %104 = vector.broadcast %cst_31 : f32 to vector<16x128xf32>
    %105 = arith.maximumf %103, %104 : vector<16x128xf32>
    %106 = arith.truncf %105 : vector<16x128xf32> to vector<16x128xbf16>
    %c0_32 = arith.constant 0 : index
    %c0_33 = arith.constant 0 : index
    %107 = vector.load %arg9[%c0_32, %c0_33] : memref<128x32xbf16, #tpu.memory_space<vmem>>, vector<128x32xbf16>
    %cst_34 = arith.constant dense<0.000000e+00> : vector<16x32xf32>
    %108 = tpu.matmul %106, %107, %cst_34 {dimension_numbers = #tpu.dot_dimension_numbers<[1], [0], [0], [1], [0, 0, 1, 1], [], []>} : vector<16x128xbf16>, vector<128x32xbf16>, vector<16x32xf32> -> vector<16x32xf32>
    %109 = arith.addf %85, %108 : vector<16x32xf32>
    %c0_35 = arith.constant 0 : index
    %c0_36 = arith.constant 0 : index
    %110 = vector.load %arg10[%c0_35, %c0_36] : memref<16x32xf32, #tpu.memory_space<vmem>>, vector<16x32xf32>
    tpu.vector_store %arg10[%c0_35, %c0_36], %109 {strides = array<i32>} : memref<16x32xf32, #tpu.memory_space<vmem>>, vector<16x32xf32>,
    return
  }
  func.func @transform_0(%arg0: i32) -> (i32, i32) {
    %c0_i32 = arith.constant 0 : i32
    %c0_i32_0 = arith.constant 0 : i32
    return %arg0, %c0_i32 : i32, i32
  }
  func.func @transform_1(%arg0: i32) -> (i32, i32, i32, i32) {
    %c0_i32 = arith.constant 0 : i32
    %c0_i32_0 = arith.constant 0 : i32
    %c0_i32_1 = arith.constant 0 : i32
    %c0_i32_2 = arith.constant 0 : i32
    return %arg0, %c0_i32, %c0_i32_0, %c0_i32_1 : i32, i32, i32, i32
  }
  func.func @transform_2(%arg0: i32) -> (i32, i32, i32, i32) {
    %c0_i32 = arith.constant 0 : i32
    %c0_i32_0 = arith.constant 0 : i32
    %c0_i32_1 = arith.constant 0 : i32
    %c0_i32_2 = arith.constant 0 : i32
    %c0_i32_3 = arith.constant 0 : i32
    return %c0_i32, %c0_i32_0, %c0_i32_1, %c0_i32_2 : i32, i32, i32, i32
  }
  func.func @transform_3(%arg0: i32) -> (i32, i32) {
    %c0_i32 = arith.constant 0 : i32
    %c0_i32_0 = arith.constant 0 : i32
    %c0_i32_1 = arith.constant 0 : i32
    return %c0_i32, %c0_i32_0 : i32, i32
  }
  func.func @transform_4(%arg0: i32) -> (i32, i32) {
    %c0_i32 = arith.constant 0 : i32
    %c0_i32_0 = arith.constant 0 : i32
    %c0_i32_1 = arith.constant 0 : i32
    return %c0_i32, %c0_i32_0 : i32, i32
  }
  func.func @transform_5(%arg0: i32) -> (i32, i32) {
    %c0_i32 = arith.constant 0 : i32
    %c0_i32_0 = arith.constant 0 : i32
    %c0_i32_1 = arith.constant 0 : i32
    return %c0_i32, %c0_i32_0 : i32, i32
  }
  func.func @transform_6(%arg0: i32) -> (i32, i32) {
    %c0_i32 = arith.constant 0 : i32
    %c0_i32_0 = arith.constant 0 : i32
    %c0_i32_1 = arith.constant 0 : i32
    return %c0_i32, %c0_i32_0 : i32, i32
  }
  func.func @transform_7(%arg0: i32) -> (i32, i32) {
    %c0_i32 = arith.constant 0 : i32
    %c0_i32_0 = arith.constant 0 : i32
    %c0_i32_1 = arith.constant 0 : i32
    return %c0_i32, %c0_i32_0 : i32, i32
  }
  func.func @transform_8(%arg0: i32) -> (i32, i32) {
    %c0_i32 = arith.constant 0 : i32
    %c0_i32_0 = arith.constant 0 : i32
    %c0_i32_1 = arith.constant 0 : i32
    return %c0_i32, %c0_i32_0 : i32, i32
  }
  func.func @transform_9(%arg0: i32) -> (i32, i32) {
    %c0_i32 = arith.constant 0 : i32
    %c0_i32_0 = arith.constant 0 : i32
    return %arg0, %c0_i32 : i32, i32
  }
}

</mosaic_0001>

<bundles_post_ra>
// kernel: tpu_custom_call.1
= control target key start
LH: loop header
LB: loop body
LE: loop exit
PB: predicated region body
PF: predicated region fallthrough
CT: control target
= control target key end

     0   :  { %14 = vsyncpa [#allocation3], 0  ;;  %s2991_s0 = inlined_call_operand.vmem [shape: f32[32,32], index: 0, kind: input, shape index: {}]   ;;  %s2992_s1 = inlined_call_operand.hbm [shape: f32[4,1,1,8], index: 1, kind: input, shape index: {}]   ;;  %s2993_s2 = inlined_call_operand.vmem [shape: f32[1,4,8,8], index: 2, kind: input, shape index: {}]   ;;  %s2994_s3 = inlined_call_operand.vmem [shape: f32[1,32], index: 3, kind: input, shape index: {}]   ;;  %s2995_s4 = inlined_call_operand.vmem [shape: bf16[32,96], index: 4, kind: input, shape index: {}]   ;;  %s2996_s5 = inlined_call_operand.hbm [shape: bf16[32,32], index: 5, kind: input, shape index: {}]   ;;  %s2997_s6 = inlined_call_operand.vmem [shape: f32[1,32], index: 6, kind: input, shape index: {}]   ;;  %s2998_s7 = inlined_call_operand.hbm [shape: bf16[32,128], index: 7, kind: input, shape index: {}]   ;;  %s2999_s8 = inlined_call_operand.vmem [shape: bf16[128,32], index: 8, kind: input, shape index: {}]   ;;  %s3000_s9 = inlined_call_operand.hbm [shape: f32[32,32], index: 9, kind: output, shape index: {}]  }
   0x1   :  { %16 = vsyncpa [#allocation3 + $0x1], 0 }
   0x2   :  { %17 = vsyncpa [#allocation6], 0 }
   0x3   :  { %18 = vsyncpa [#allocation4], 0 }
   0x4   :  { %20 = vsyncpa [#allocation4 + $0x1], 0  ;;  %s2473_s30 = smov 0   ;;  %s2475_s10 = smov 0  }
   0x5   :  { %s2477_s11 = smov 0   ;;  %s2479_s12 = smov 0  }
   0x6 LB: > { %s2494_s13 = sadd.s32 4294967295, %s2402_s12   ;;  %s1836_s14 = sadd.s32 4294967294, %s2402_s12   ;;  %s2402_s12 = sphi %s2479_s12, %s3023_s12   ;;  %s2398_s11 = sphi %s2477_s11, %s3022_s11   ;;  %s2394_s10 = sphi %s2475_s10, %s3021_s10   ;;  %s2390_s30 = sphi %s2473_s30, %s3020_s30  }
   0x7   : > { %p72_p0 = scmp.ne.s32.totalorder %s2394_s10, %s2390_s30  ;;  %p3001_p1 = scmp.eq.s32.totalorder %s2494_s13, 0 }
   0x8   : > { %p249_p3 = scmp.eq.s32.totalorder %s1836_s14, 1  ;;  %p1837_p5 = scmp.ge.s32.totalorder %s2402_s12, 1 }
   0x9   : > { %p2503_p4 = por %p3001_p1, %p72_p0  ;;  %p256_p7 = scmp.lt.s32.totalorder %s2402_s12, 3 }
   0xa   : > { %p2508_p6 = por %p249_p3, %p72_p0  ;;  %s2404_s18 = smov [#allocation5]  }
   0xb   : > { %s3005_s15 = scalar_select %p2503_p4, 1, 0 }
   0xc   : > { %s3006_s16 = scalar_select %p2508_p6, 1, 0 }
   0xd   : > { %p2513_p8 = pnand %p1837_p5, %p256_p7  ;;  %s277_s19 = sshll.u32 %s2404_s18, 4  ;;  %s2517_s19 = int_to_ptr.vmem [resolvable:$true] %s277_s19 }
   0xe   : > { %3007 = sst [smem:[#allocation12_spill]] %s3006_s16  ;;  %s2405_s21 = smov [#allocation7]  }
   0xf   : > { %p2107_p9 = pneg %p2513_p8  ;;  %s293_s22 = sshll.u32 %s2405_s21, 4  ;;  %s2528_s22 = int_to_ptr.vmem [resolvable:$true] %s293_s22 }
  0x10   : > { %s2246_s25 = scalar_lea.hbm %s2996_s5, 256 }
  0x11   : > { %p2524_p11 = pnand %p2107_p9, %p3001_p1  ;;  %p2247_p12 = scmp.ne.s32.totalorder %s2996_s5, %s2246_s25 }
  0x12   : > { %p2253_p5 = scmp.lt.u32.totalorder %s2246_s25, %s2996_s5 }
  0x13   : > { %p2248_p13 = pneg %p2524_p11 }
  0x15   : > { %p2249_p0 = pnand %p2248_p13, %p2247_p12 }
  0x17   : > { %p2250_p3 = pneg %p2249_p0 }
  0x19   : > { %p2255_p7 = pnand %p2253_p5, %p2250_p3 }
  0x1b   : > { %2258 = shalt.err (!%p2255_p7)
}
  0x1c   : > { %s2259_s14 = scalar_lea.vmem %s2517_s19, 256  ;;  %p2267_p2 = scmp.lt.s32.totalorder %s2517_s19, %s2517_s19 }
  0x1d   : > { %p2260_p9 = scmp.ne.s32.totalorder %s2517_s19, %s2259_s14  ;;  %p2268_p12 = scmp.lt.s32.totalorder %s2259_s14, %s2259_s14 }
  0x1f   : > { %p2262_p10 = pnand %p2260_p9, %p2248_p13  ;;  %p2269_p0 = por %p2268_p12, %p2267_p2 }
  0x21   : > { %p2263_p1 = pneg %p2262_p10 }
  0x23   : > { %p2270_p6 = pnand %p2269_p0, %p2263_p1 }
  0x25   : > { %2273 = shalt.err (!%p2270_p6)
}
  0x26   : > { %s2406_s18 = smov 64   ;;  %s2407_s21 = smov 4  }
  0x27   : > { %2110 = dma.hbm_to_vmem [thread:$0]  (!%p2524_p11), %s2996_s5, 256, %s2517_s19, [#allocation6], %s2406_s18, %s2406_s18, %s2407_s21  }
  0x28   : > { %s2274_s27 = scalar_lea.hbm %s2998_s7, 256 }
  0x29   : > { %p2275_p2 = scmp.ne.s32.totalorder %s2998_s7, %s2274_s27  ;;  %p2281_p10 = scmp.lt.u32.totalorder %s2274_s27, %s2998_s7 }
  0x2b   : > { %p2277_p1 = pnand %p2275_p2, %p2248_p13 }
  0x2d   : > { %p2278_p6 = pneg %p2277_p1 }
  0x2f   : > { %p2283_p3 = pnand %p2281_p10, %p2278_p6 }
  0x31   : > { %2286 = shalt.err (!%p2283_p3)
}
  0x32   : > { %s2287_s19 = scalar_lea.vmem %s2528_s22, 256  ;;  %p2295_p12 = scmp.lt.s32.totalorder %s2528_s22, %s2528_s22 }
  0x33   : > { %p2288_p5 = scmp.ne.s32.totalorder %s2528_s22, %s2287_s19  ;;  %p2296_p0 = scmp.lt.s32.totalorder %s2287_s19, %s2287_s19 }
  0x35   : > { %p2290_p7 = pnand %p2288_p5, %p2248_p13  ;;  %p2297_p2 = por %p2296_p0, %p2295_p12 }
  0x37   : > { %p2291_p9 = pneg %p2290_p7 }
  0x39   : > { %p2298_p1 = pnand %p2297_p2, %p2291_p9 }
  0x3b   : > { %2301 = shalt.err (!%p2298_p1)
}
  0x3c   : > { %2113 = dma.hbm_to_vmem [thread:$0]  (!%p2524_p11), %s2998_s7, 256, %s2528_s22, [#allocation6], %s2406_s18, %s2406_s18, %s2407_s21  }
  0x3d   : > { %s2583_s24 = sadd.s32 1, %s2402_s12   ;;  %s59_s20 = sadd.s32 1, %s2398_s11 }
  0x3e   : > { %s56_s25 = ssub.s32 %s2402_s12, %s2583_s24  ;;  %p66_p13 = scmp.ne.s32.totalorder %s2398_s11, %s2394_s10 }
  0x3f   : > { %p57_p6 = scmp.eq.s32.totalorder %s56_s25, 0  ;;  %p67_p10 = scmp.eq.s32.totalorder %s2402_s12, 0 }
  0x40   : > { %p3010_p3 = scmp.eq.s32.totalorder %s2494_s13, 1  ;;  %p2124_p7 = scmp.lt.s32.totalorder %s2402_s12, 2 }
  0x41   : > { %s2599_s27 = scalar_select %p57_p6, %s2398_s11, %s59_s20  }
  0x42   : > { %p2593_p5 = por %p3010_p3, %p66_p13  ;;  %p68_p9 = por %p67_p10, %p66_p13 }
  0x43   : > { %s319_s28 = sand.u32 1, %s2398_s11   ;;  %s1901_s22 = sshll.u32 %s2402_s12, 5 }
  0x44   : > { %s3011_s26 = scalar_select %p2593_p5, 1, 0 }
  0x45   : > { %s1841_s29 = sshll.u32 %s319_s28, 1  ;;  %s2606_s14 = scalar_lea.hbm %s2992_s1, %s1901_s22 }
  0x46   : > { %s323_s19 = scalar_lea.vmem [#allocation2], %s1841_s29  ;;  %p2610_p11 = pnand %p2124_p7, %p68_p9 }
  0x47   : > { %s330_s16 = sshll.u32 %s323_s19, 4  ;;  %s2614_s20 = scalar_lea.sflag [#allocation3], %s319_s28  ;;  %s2608_s16 = int_to_ptr.vmem [resolvable:$true] %s330_s16 }
  0x48   : > { %s2302_s25 = scalar_lea.hbm %s2606_s14, 32  ;;  %p2304_p0 = pneg %p2610_p11 }
  0x49   : > { %p2303_p12 = scmp.ne.s32.totalorder %s2606_s14, %s2302_s25  ;;  %s2307_s18 = scalar_lea.hbm %s2992_s1, 64 }
  0x4a   : > { %p2308_p13 = scmp.lt.u32.totalorder %s2606_s14, %s2992_s1  ;;  %p2309_p6 = scmp.lt.u32.totalorder %s2307_s18, %s2302_s25 }
  0x4b   : > { %p2305_p2 = pnand %p2304_p0, %p2303_p12  ;;  %p2311_p3 = scmp.lt.u32.totalorder %s2302_s25, %s2606_s14 }
  0x4c   : > { %p2310_p10 = por %p2309_p6, %p2308_p13 }
  0x4d   : > { %p2306_p1 = pneg %p2305_p2 }
  0x4e   : > { %p2312_p7 = por %p2311_p3, %p2310_p10 }
  0x50   : > { %p2313_p9 = pnand %p2312_p7, %p2306_p1 }
  0x52   : > { %2316 = shalt.err (!%p2313_p9)
}
  0x53   : > { %s2317_s28 = scalar_lea.vmem %s2608_s16, 32  ;;  %s2408_s29 = smov [#allocation2]  }
  0x54   : > { %p2318_p12 = scmp.ne.s32.totalorder %s2608_s16, %s2317_s28  ;;  %s2322_s22 = sshll.u32 %s2408_s29, 4  ;;  %s2323_s22 = int_to_ptr.vmem [resolvable:$false] %s2322_s22 }
  0x55   : > { %s2324_s21 = scalar_lea.vmem %s2323_s22, 64  ;;  %p2325_p4 = scmp.lt.s32.totalorder %s2608_s16, %s2323_s22 }
  0x56   : > { %p2320_p2 = pnand %p2318_p12, %p2304_p0  ;;  %p2326_p13 = scmp.lt.s32.totalorder %s2324_s21, %s2317_s28 }
  0x58   : > { %p2321_p5 = pneg %p2320_p2  ;;  %p2327_p6 = por %p2326_p13, %p2325_p4 }
  0x5a   : > { %p2328_p10 = pnand %p2327_p6, %p2321_p5 }
  0x5c   : > { %2331 = shalt.err (!%p2328_p10)
}
  0x5d   : > { %s2409_s25 = smov 16   ;;  %s2410_s18 = smov 1  }
  0x5e   : > { %2117 = dma.hbm_to_vmem [thread:$0]  (!%p2610_p11), %s2606_s14, 32, %s2608_s16, %s2614_s20, %s2409_s25, %s2409_s25, %s2410_s18  }
  0x5f   : > { %342 = sbr.rel (%p2513_p8) target bundleno = 2495 (0x9bf), region = 56  ;;  %s2645_s19 = sand.u32 (!%p2513_p8), 1, %s2394_s10  }
  0x60   : > { %s1845_s28 = sshll.u32 (!%p2513_p8), %s2645_s19, 1  ;;  %s345_s29 = scalar_lea.sflag (!%p2513_p8), [#allocation3], %s2645_s19 }
  0x61   : > { %s2649_s22 = scalar_lea.vmem (!%p2513_p8), [#allocation2], %s1845_s28  ;;  %p3013_p4 = scmp.ne.s32.totalorder (!%p2513_p8), %s3005_s15, 0 }
  0x66   : > { %2377 = dma.done.wait (%p3013_p4), %s345_s29, 32  }
  0x67   : > { %2379 = vsyncadd (%p3013_p4), %s345_s29, 4294967264  ;;  %p3014_p5 = scmp.eq.s32.totalorder %s2494_s13, 0 }
  0x69   : > { %2381 = dma.done.wait (%p3014_p5), [#allocation6], 512   ;;  %p3015_p8 = pmov %p3014_p5 }
  0x6a   : > { %s1849_s17 = sshll.u32 %s2494_s13, 1  ;;  %vm409_vm0 = vcmask 261120   ;;  %v2192_v6 = vld [vmem:[%s2995_s4] sm:$0xff]   ;;  %v2411_v7 = vmov 0.0   ;;  %vm2412_vm1 = vmmov 0   ;;  %v2193_v8 = vld [vmem:[%s2995_s4 + $0x8] sm:$0xff]  }
  0x6b   : > { %2383 = vsyncadd (%p3015_p8), [#allocation6], 4294966784  ;;  %p397_p11 = scmp.lt.s32.totalorder %s1849_s17, 3  ;;  %1955 = vmatprep.subr.bf16.mxu0 %v2411_v7  ;;  %1959 = vmatprep.mubr.msk.bf16.mxu0 %vm2412_vm1, %v2411_v7  ;;  %v1851_v18 = vld [vmem:[%s2994_s3] ss:$0 sm:$0xff]  ;;  %s2415_s16 = smov 104  }
  0x6c   : > { %1956 = vmatpush3.bf16.msra.mxu0 %v2192_v6  ;;  %1975 = vmatprep.subr.bf16.mxu1 %v2411_v7  ;;  %s2416_s23 = smov 96   ;;  %vm515_vm2 = vcmask 64512   ;;  %vm1045_vm3 = vcmask 1043456   ;;  %v912_v61 = vld [vmem:[%s2993_s2] sm:$0xff]  ;;  %vm1451_vm4 = vcmask 130048   ;;  %vm1454_vm5 = vcmask 195584  }
  0x6d   : > { %s3025_s17 = smov (!%p397_p11, %s1849_s17), 3  ;;  %1957 = vmatprep.subr.bf16.mxu0 %v2411_v7  ;;  %1977 = vmatprep.mubr.msk.bf16.mxu1 %vm2412_vm1, %v2411_v7  ;;  %v1871_v63 = vld [vmem:[%s2649_s22] ss:$0 sm:$0xff]  ;;  %s1848_s29 = sshll.u32 %s2645_s19, 4 }
  0x6e   : > { %s1850_s14 = sshll.u32 %s3025_s17, 3  ;;  %s2413_s17 = smov 112  }
  0x6f   : > { %s400_s20 = scalar_lea.vmem %s2991_s0, %s1850_s14  ;;  %s2414_s14 = smov 120  }
  0x70   : > { %v2663_v0 = vld [vmem:[%s400_s20] sm:$0xff]  ;;  %v2665_v1 = vld [vmem:[%s400_s20 + $0x8] sm:$0xff]  ;;  %1958 = vmatpush3.bf16.msra.mxu0 %v2193_v8  ;;  %s2417_s20 = smov 64   ;;  %p3016_p1 = scmp.ne.s32.totalorder %s3011_s26, 0 }
  0x71   : > { %v407_v2 = vmul.f32 %v2663_v0, %v2663_v0  ;;  %v408_v3 = vmul.f32 %v2665_v1, %v2665_v1  ;;  %1963 = vmatprep.subr.bf16.mxu0 %v2411_v7  ;;  %s2421_s18 = smov [#allocation8]  }
  0x73   : > { %v410_v4 = vsel %vm409_vm0, %v407_v2, 0.0  ;;  %v413_v5 = vsel %vm409_vm0, %v408_v3, 0.0 }
  0x74   : > { %411 = vadd.xlane.f32.xlu0 %v410_v4 }
  0x78   : > { %414 = vadd.xlane.f32.xlu0 %v413_v5 }
 0x101   : > { %v412_v9 = vpop.xlane.xlu0 %411 }
 0x102   : > { %v417_v10 = vmul.f32 0.03125, %v412_v9 }
 0x104   : > { %v419_v11 = vadd.f32 1e-06, %v417_v10  ;;  %v1872_v10 = vld [vmem:[%s2649_s22 + $0x1] ss:$0 sm:$0xff]  ;;  %s2336_s22 = sshll.u32 %s2421_s18, 4  ;;  %s2337_s22 = int_to_ptr.vmem [resolvable:$false] %s2336_s22 }
 0x105   : > { %v415_v12 = vpop.xlane.xlu0 %414  ;;  %s2338_s28 = scalar_lea.vmem %s2337_s22, 512 }
 0x106   : > { %2206 = vrsqrt.f32 %v419_v11  ;;  %v418_v13 = vmul.f32 0.03125, %v415_v12 }
 0x108   : > { %v420_v14 = vadd.f32 1e-06, %v418_v13 }
 0x10a   : > { %2208 = vrsqrt.f32 %v420_v14 }
 0x110   : > { %v2207_v15 = vpop.eup %2206 }
 0x111   : > { %v423_v16 = vmul.f32 %v2207_v15, %v2663_v0 }
 0x113   : > { %v432_v20 = vmul.f32 %v1851_v18, %v423_v16 }
 0x114   : > { %v2209_v17 = vpop.eup %2208 }
 0x115   : > { %v424_v19 = vmul.f32 %v2209_v17, %v2665_v1  ;;  %v913_v17 = vld [vmem:[%s2993_s2 + $0x8] sm:$0xff] }
 0x117   : > { %v433_v21 = vmul.f32 %v1851_v18, %v424_v19 }
 0x119   : > { %v434_v22 = vpack.c.bf16 %v433_v21, %v432_v20 }
 0x11b   : > { %1960 = vmatmul.mubr.msk.bf16.vlgmr.msra.gmra.mrb[0].mxu0 %vm409_vm0, %v434_v22 }
 0x11c   : > { %1965 = vmatprep.mubr.msk.bf16.mxu0 %vm2412_vm1, %v2411_v7 }
 0x1ee   : > { %v488_v23 = vpop.f32.mrb[0].mxu0 }
 0x1ef   : > { %v1902_v24 = vpack.c.bf16 %v488_v23, %v488_v23  ;;  %v1961_v25 = vpop.f32.mrb[1].mxu0 }
 0x1f0   : > { %v491_v26 = vpop.f32.mrb[2].mxu0 }
 0x1f1   : > { %505 = vrot.lane.b32.xlu0 %v1902_v24, %s2413_s17  ;;  %501 = vrot.lane.b32.xlu1 %v1902_v24, %s2414_s14  ;;  %v1962_v27 = vpop.f32.mrb[3].mxu0  ;;  %v1903_v28 = vpack.c.bf16 %v491_v26, %v491_v26 }
 0x1f5   : > { %503 = vrot.lane.b32.xlu1 %v1903_v28, %s2414_s14  ;;  %s2418_s14 = smov 8  }
 0x1f9   : > { %507 = vrot.lane.b32.xlu1 %v1903_v28, %s2413_s17  ;;  %s395_s17 = scalar_lea.vmem [#allocation8], %s1848_s29 }
 0x1fd   : > { %509 = vrot.lane.b32.xlu1 %v1902_v24, %s2415_s16 }
 0x201   : > { %511 = vrot.lane.b32.xlu1 %v1903_v28, %s2415_s16  ;;  %s2419_s16 = smov 16  }
 0x205   : > { %513 = vrot.lane.b32.xlu1 %v1902_v24, %s2416_s23 }
 0x209   : > { %562 = vrot.lane.b32.xlu1 %v1903_v28, %s2416_s23 }
 0x263   : > { %v502_v29 = vpop.permute.xlu1 %501  ;;  %v506_v31 = vpop.permute.xlu0 %505 }
 0x264   : > { %v2695_v30 = vcombine.low %v502_v29, %v502_v29  ;;  %v2698_v33 = vcombine.low %v506_v31, %v506_v31 }
 0x266   : > { %612 = vrot.lane.b32.xlu1 %v2695_v30, %s2416_s23 }
 0x267   : > { %v504_v32 = vpop.permute.xlu1 %503 }
 0x268   : > { %v2700_v34 = vcombine.low %v504_v32, %v504_v32 }
 0x26a   : > { %712 = vrot.lane.b32.xlu1 %v2698_v33, %s2416_s23  ;;  %662 = vrot.lane.b32.xlu0 %v2700_v34, %s2416_s23 }
 0x26b   : > { %v508_v35 = vpop.permute.xlu1 %507 }
 0x26c   : > { %v2704_v36 = vcombine.low %v508_v35, %v508_v35 }
 0x26e   : > { %762 = vrot.lane.b32.xlu0 %v2704_v36, %s2416_s23 }
 0x26f   : > { %v510_v37 = vpop.permute.xlu1 %509 }
 0x270   : > { %v2707_v38 = vcombine.low %v510_v37, %v510_v37 }
 0x272   : > { %812 = vrot.lane.b32.xlu1 %v2707_v38, %s2416_s23 }
 0x273   : > { %v512_v39 = vpop.permute.xlu1 %511 }
 0x274   : > { %v2710_v40 = vcombine.low %v512_v39, %v512_v39 }
 0x276   : > { %1089 = vrot.lane.b32.xlu1 %v1903_v28, %s2417_s20  ;;  %862 = vrot.lane.b32.xlu0 %v2710_v40, %s2416_s23  ;;  %s2420_s23 = smov 24  }
 0x277   : > { %v514_v41 = vpop.permute.xlu1 %513 }
 0x278   : > { %v520_v42 = vsel %vm515_vm2, %v514_v41, 0 }
 0x279   : > { %1964 = vmatpush3.bf16.xpose.msra.mxu0 %v520_v42 }
 0x27a   : > { %1040 = vrot.lane.b32.xlu0 %v1902_v24, %s2417_s20  ;;  %1969 = vmatprep.subr.bf16.mxu0 %v2411_v7 }
 0x27b   : > { %v563_v43 = vpop.permute.xlu1 %562 }
 0x27c   : > { %v568_v44 = vsel %vm515_vm2, %v563_v43, 0 }
 0x280   : > { %1966 = vmatmul.mubr.msk.bf16.vlgmr.msra.gmra.mrb[4].mxu0 %vm515_vm2, %v1902_v24 }
 0x281   : > { %1970 = vmatpush3.bf16.xpose.msra.mxu0 %v568_v44  ;;  %1971 = vmatprep.mubr.msk.bf16.mxu0 %vm2412_vm1, %v2411_v7 }
 0x282   : > { %1981 = vmatprep.subr.bf16.mxu0 %v2411_v7 }
 0x288   : > { %1972 = vmatmul.mubr.msk.bf16.vlgmr.msra.gmra.mrb[8].mxu0 %vm515_vm2, %v1903_v28 }
 0x289   : > { %1983 = vmatprep.mubr.msk.bf16.mxu0 %vm2412_vm1, %v2411_v7 }
 0x2d8   : > { %v613_v45 = vpop.permute.xlu1 %612 }
 0x2d9   : > { %v618_v46 = vsel %vm515_vm2, %v613_v45, 0 }
 0x2da   : > { %1976 = vmatpush3.bf16.xpose.msra.mxu1 %v618_v46 }
 0x2db   : > { %1987 = vmatprep.subr.bf16.mxu1 %v2411_v7 }
 0x2dc   : > { %v663_v47 = vpop.permute.xlu0 %662  ;;  %v713_v49 = vpop.permute.xlu1 %712 }
 0x2dd   : > { %v668_v48 = vsel %vm515_vm2, %v663_v47, 0  ;;  %v718_v50 = vsel %vm515_vm2, %v713_v49, 0 }
 0x2de   : > { %1982 = vmatpush3.bf16.xpose.msra.mxu0 %v668_v48 }
 0x2df   : > { %1993 = vmatprep.subr.bf16.mxu0 %v2411_v7 }
 0x2e0   : > { %v763_v51 = vpop.permute.xlu0 %762 }
 0x2e1   : > { %1978 = vmatmul.mubr.msk.bf16.vlgmr.msra.gmra.mrb[0].mxu1 %vm515_vm2, %v502_v29  ;;  %v768_v52 = vsel %vm515_vm2, %v763_v51, 0  ;;  %v914_v29 = vld [vmem:[%s2993_s2 + $0x10] sm:$0xff] }
 0x2e2   : > { %1988 = vmatpush3.bf16.xpose.msra.mxu1 %v718_v50  ;;  %1989 = vmatprep.mubr.msk.bf16.mxu1 %vm2412_vm1, %v2411_v7  ;;  %v915_v50 = vld [vmem:[%s2993_s2 + $0x18] sm:$0xff] }
 0x2e3   : > { %1999 = vmatprep.subr.bf16.mxu1 %v2411_v7 }
 0x2e4   : > { %v813_v53 = vpop.permute.xlu1 %812 }
 0x2e5   : > { %1984 = vmatmul.mubr.msk.bf16.vlgmr.msra.gmra.mrb[12].mxu0 %vm515_vm2, %v504_v32  ;;  %v818_v55 = vsel %vm515_vm2, %v813_v53, 0 }
 0x2e6   : > { %1994 = vmatpush3.bf16.xpose.msra.mxu0 %v768_v52  ;;  %1995 = vmatprep.mubr.msk.bf16.mxu0 %vm2412_vm1, %v2411_v7 }
 0x2e7   : > { %2005 = vmatprep.subr.bf16.mxu0 %v2411_v7 }
 0x2e8   : > { %v863_v54 = vpop.permute.xlu0 %862  ;;  %v1090_v59 = vpop.permute.xlu1 %1089 }
 0x2e9   : > { %1990 = vmatmul.mubr.msk.bf16.vlgmr.msra.gmra.mrb[4].mxu1 %vm515_vm2, %v506_v31  ;;  %v868_v56 = vsel %vm515_vm2, %v863_v54, 0  ;;  %v1095_v60 = vsel %vm1045_vm3, %v1090_v59, 0 }
 0x2ea   : > { %2000 = vmatpush3.bf16.xpose.msra.mxu1 %v818_v55  ;;  %2001 = vmatprep.mubr.msk.bf16.mxu1 %vm2412_vm1, %v2411_v7 }
 0x2eb   : > { %2011 = vmatprep.subr.bf16.mxu1 %v2411_v7 }
 0x2ec   : > { %v1041_v57 = vpop.permute.xlu0 %1040 }
 0x2ed   : > { %1996 = vmatmul.mubr.msk.bf16.vlgmr.msra.gmra.mrb[16].mxu0 %vm515_vm2, %v508_v35  ;;  %v1047_v58 = vsel %vm1045_vm3, %v1041_v57, 0 }
 0x2ee   : > { %2006 = vmatpush3.bf16.xpose.msra.mxu0 %v868_v56  ;;  %2007 = vmatprep.mubr.msk.bf16.mxu0 %vm2412_vm1, %v2411_v7 }
 0x2ef   : > { %2017 = vmatprep.subr.bf16.mxu0 %v2411_v7 }
 0x2f1   : > { %2002 = vmatmul.mubr.msk.bf16.vlgmr.msra.gmra.mrb[8].mxu1 %vm515_vm2, %v510_v37 }
 0x2f2   : > { %2012 = vmatpush3.bf16.msra.mxu1 %v1047_v58  ;;  %2013 = vmatprep.mubr.msk.bf16.mxu1 %vm2412_vm1, %v2411_v7 }
 0x2f3   : > { %2023 = vmatprep.subr.bf16.mxu1 %v2411_v7 }
 0x2f5   : > { %2008 = vmatmul.mubr.msk.bf16.vlgmr.msra.gmra.mrb[20].mxu0 %vm515_vm2, %v512_v39 }
 0x2f6   : > { %2018 = vmatpush3.bf16.msra.mxu0 %v1095_v60  ;;  %2019 = vmatprep.mubr.msk.bf16.mxu0 %vm2412_vm1, %v2411_v7 }
 0x2f7   : > { %2029 = vmatprep.subr.bf16.mxu0 %v2411_v7 }
 0x353   : > { %v556_v62 = vpop.f32.mrb[4].mxu0 }
 0x354   : > { %v916_v2 = vadd.f32 %v912_v61, %v556_v62  ;;  %v1967_v3 = vpop.f32.mrb[5].mxu0 }
 0x355   : > { %v559_v4 = vpop.f32.mrb[6].mxu0 }
 0x356   : > { %v1968_v5 = vpop.f32.mrb[7].mxu0  ;;  %v2763_v6 = vadd.f32 %v1871_v63, %v916_v2 }
 0x358   : > { %v944_v8 = vsel %vm515_vm2, %v2763_v6, -inf }
 0x359   : > { %945 = vmax.xlane.f32.xlu1 %v944_v8 }
 0x35b   : > { %v604_v9 = vpop.f32.mrb[8].mxu0 }
 0x35c   : > { %v917_v11 = vadd.f32 %v912_v61, %v604_v9  ;;  %v1973_v12 = vpop.f32.mrb[9].mxu0 }
 0x35d   : > { %v607_v13 = vpop.f32.mrb[10].mxu0 }
 0x35e   : > { %v1974_v14 = vpop.f32.mrb[11].mxu0  ;;  %v937_v15 = vadd.f32 %v1872_v10, %v917_v11 }
 0x360   : > { %v947_v16 = vsel %vm515_vm2, %v937_v15, -inf }
 0x361   : > { %948 = vmax.xlane.f32.xlu0 %v947_v16 }
 0x3b4   : > { %v654_v18 = vpop.f32.mrb[0].mxu1 }
 0x3b5   : > { %v918_v19 = vadd.f32 %v913_v17, %v654_v18  ;;  %v1979_v20 = vpop.f32.mrb[1].mxu1 }
 0x3b6   : > { %v657_v21 = vpop.f32.mrb[2].mxu1 }
 0x3b7   : > { %v1980_v22 = vpop.f32.mrb[3].mxu1  ;;  %v2772_v23 = vadd.f32 %v1871_v63, %v918_v19 }
 0x3b8   : > { %v704_v24 = vpop.f32.mrb[12].mxu0 }
 0x3b9   : > { %v919_v25 = vadd.f32 %v913_v17, %v704_v24  ;;  %v1985_v26 = vpop.f32.mrb[13].mxu0  ;;  %v950_v27 = vsel %vm515_vm2, %v2772_v23, -inf }
 0x3ba   : > { %951 = vmax.xlane.f32.xlu0 %v950_v27  ;;  %v707_v28 = vpop.f32.mrb[14].mxu0 }
 0x3bb   : > { %v1986_v31 = vpop.f32.mrb[15].mxu0  ;;  %v939_v32 = vadd.f32 %v1872_v10, %v919_v25 }
 0x3bc   : > { %v754_v35 = vpop.f32.mrb[4].mxu1 }
 0x3bd   : > { %v920_v37 = vadd.f32 %v914_v29, %v754_v35  ;;  %v1991_v39 = vpop.f32.mrb[5].mxu1  ;;  %v953_v41 = vsel %vm515_vm2, %v939_v32, -inf }
 0x3be   : > { %v757_v42 = vpop.f32.mrb[6].mxu1  ;;  %954 = vmax.xlane.f32.xlu1 %v953_v41 }
 0x3bf   : > { %v1992_v43 = vpop.f32.mrb[7].mxu1  ;;  %v2780_v44 = vadd.f32 %v1871_v63, %v920_v37 }
 0x3c0   : > { %v804_v45 = vpop.f32.mrb[16].mxu0 }
 0x3c1   : > { %v921_v46 = vadd.f32 %v914_v29, %v804_v45  ;;  %v1997_v47 = vpop.f32.mrb[17].mxu0  ;;  %v956_v48 = vsel %vm515_vm2, %v2780_v44, -inf }
 0x3c2   : > { %957 = vmax.xlane.f32.xlu0 %v956_v48  ;;  %v807_v49 = vpop.f32.mrb[18].mxu0 }
 0x3c3   : > { %v1998_v51 = vpop.f32.mrb[19].mxu0  ;;  %v941_v52 = vadd.f32 %v1872_v10, %v921_v46 }
 0x3c4   : > { %v854_v53 = vpop.f32.mrb[8].mxu1 }
 0x3c5   : > { %v922_v54 = vadd.f32 %v915_v50, %v854_v53  ;;  %v2003_v55 = vpop.f32.mrb[9].mxu1  ;;  %v959_v56 = vsel %vm515_vm2, %v941_v52, -inf }
 0x3c6   : > { %v857_v57 = vpop.f32.mrb[10].mxu1  ;;  %960 = vmax.xlane.f32.xlu1 %v959_v56 }
 0x3c7   : > { %v2004_v58 = vpop.f32.mrb[11].mxu1  ;;  %v2788_v59 = vadd.f32 %v1871_v63, %v922_v54 }
 0x3c8   : > { %v904_v60 = vpop.f32.mrb[20].mxu0 }
 0x3c9   : > { %v923_v61 = vadd.f32 %v915_v50, %v904_v60  ;;  %v2009_v62 = vpop.f32.mrb[21].mxu0  ;;  %v962_v2 = vsel %vm515_vm2, %v2788_v59, -inf }
 0x3ca   : > { %963 = vmax.xlane.f32.xlu0 %v962_v2  ;;  %v907_v3 = vpop.f32.mrb[22].mxu0 }
 0x3cb   : > { %v2010_v4 = vpop.f32.mrb[23].mxu0  ;;  %v943_v5 = vadd.f32 %v1872_v10, %v923_v61 }
 0x3cd   : > { %v965_v8 = vsel %vm515_vm2, %v943_v5, -inf }
 0x3ce   : > { %966 = vmax.xlane.f32.xlu1 %v965_v8 }
 0x3df   : > { %1137 = vrot.lane.b32.xlu1 %v2695_v30, %s2417_s20 }
 0x3e0   : > { %1185 = vrot.lane.b32.xlu0 %v2700_v34, %s2417_s20 }
 0x3e6   : > { %v946_v63 = vpop.xlane.xlu1 %945 }
 0x3e7   : > { %v968_v9 = vsub.f32 %v2763_v6, %v946_v63 }
 0x3e9   : > { %v976_v11 = vmul.f32 1.442695, %v968_v9 }
 0x3eb   : > { %2210 = vpow2.f32 %v976_v11 }
 0x3ee   : > { %v949_v12 = vpop.xlane.xlu0 %948 }
 0x3ef   : > { %v969_v13 = vsub.f32 %v937_v15, %v949_v12 }
 0x3f1   : > { %v978_v14 = vmul.f32 1.442695, %v969_v13 }
 0x3f3   : > { %2212 = vpow2.f32 %v978_v14 }
 0x3f5   : > { %v2211_v16 = vpop.eup %2210 }
 0x3f6   : > { %v992_v10 = vsel %vm515_vm2, %v2211_v16, 0.0 }
 0x3fd   : > { %v2213_v17 = vpop.eup %2212 }
 0x3fe   : > { %v995_v18 = vsel %vm515_vm2, %v2213_v17, 0.0 }
 0x3ff   : > { %993 = vadd.xlane.f32.xlu0 %v992_v10 }
 0x403   : > { %996 = vadd.xlane.f32.xlu1 %v995_v18 }
 0x414   : > { %1233 = vrot.lane.b32.xlu1 %v2698_v33, %s2417_s20 }
 0x447   : > { %v952_v30 = vpop.xlane.xlu0 %951 }
 0x448   : > { %v970_v34 = vsub.f32 %v2772_v23, %v952_v30 }
 0x44a   : > { %v980_v6 = vmul.f32 1.442695, %v970_v34 }
 0x44b   : > { %v955_v19 = vpop.xlane.xlu1 %954 }
 0x44c   : > { %2214 = vpow2.f32 %v980_v6  ;;  %v971_v15 = vsub.f32 %v939_v32, %v955_v19 }
 0x44e   : > { %v982_v20 = vmul.f32 1.442695, %v971_v15 }
 0x44f   : > { %v958_v39 = vpop.xlane.xlu0 %957 }
 0x450   : > { %2216 = vpow2.f32 %v982_v20  ;;  %v972_v41 = vsub.f32 %v2780_v44, %v958_v39 }
 0x452   : > { %v984_v43 = vmul.f32 1.442695, %v972_v41 }
 0x453   : > { %v961_v21 = vpop.xlane.xlu1 %960 }
 0x454   : > { %v973_v22 = vsub.f32 %v941_v52, %v961_v21 }
 0x456   : > { %v2803_v24 = vpop.eup %2214  ;;  %v986_v25 = vmul.f32 1.442695, %v973_v22 }
 0x457   : > { %v998_v26 = vsel %vm515_vm2, %v2803_v24, 0.0  ;;  %v964_v42 = vpop.xlane.xlu0 %963 }
 0x458   : > { %2218 = vpow2.f32 %v986_v25  ;;  %999 = vadd.xlane.f32.xlu0 %v998_v26  ;;  %v974_v45 = vsub.f32 %v2788_v59, %v964_v42 }
 0x45a   : > { %v2807_v33 = vpop.eup %2216  ;;  %v988_v46 = vmul.f32 1.442695, %v974_v45 }
 0x45b   : > { %v967_v27 = vpop.xlane.xlu1 %966  ;;  %v1001_v23 = vsel %vm515_vm2, %v2807_v33, 0.0  ;;  %v1186_v47 = vpop.permute.xlu0 %1185 }
 0x45c   : > { %v975_v28 = vsub.f32 %v943_v5, %v967_v27  ;;  %1002 = vadd.xlane.f32.xlu1 %v1001_v23  ;;  %v1191_v59 = vsel %vm1045_vm3, %v1186_v47, 0 }
 0x45e   : > { %v990_v29 = vmul.f32 1.442695, %v975_v28 }
 0x45f   : > { %v1138_v49 = vpop.permute.xlu1 %1137 }
 0x460   : > { %2220 = vpow2.f32 %v990_v29  ;;  %v1143_v56 = vsel %vm1045_vm3, %v1138_v49, 0 }
 0x461   : > { %2222 = vpow2.f32 %v984_v43 }
 0x462   : > { %v2811_v31 = vpop.eup %2218  ;;  %2224 = vpow2.f32 %v988_v46 }
 0x463   : > { %v1007_v32 = vsel %vm515_vm2, %v2811_v31, 0.0 }
 0x464   : > { %1008 = vadd.xlane.f32.xlu1 %v1007_v32 }
 0x46a   : > { %v2815_v35 = vpop.eup %2220 }
 0x46b   : > { %v1013_v37 = vsel %vm515_vm2, %v2815_v35, 0.0  ;;  %v2825_v48 = vpop.eup %2222 }
 0x46c   : > { %1014 = vadd.xlane.f32.xlu1 %v1013_v37  ;;  %v2829_v51 = vpop.eup %2224 }
 0x46d   : > { %v1010_v52 = vsel %vm515_vm2, %v2829_v51, 0.0 }
 0x46e   : > { %1281 = vrot.lane.b32.xlu0 %v2704_v36, %s2417_s20  ;;  %v1004_v36 = vsel %vm515_vm2, %v2825_v48, 0.0 }
 0x47d   : > { %1329 = vrot.lane.b32.xlu1 %v2707_v38, %s2417_s20 }
 0x48c   : > { %v994_v50 = vpop.xlane.xlu0 %993 }
 0x48d   : > { %2226 = vrcp.f32 %v994_v50  ;;  %1005 = vadd.xlane.f32.xlu0 %v1004_v36 }
 0x490   : > { %v997_v44 = vpop.xlane.xlu1 %996 }
 0x491   : > { %2228 = vrcp.f32 %v997_v44  ;;  %1011 = vadd.xlane.f32.xlu0 %v1010_v52 }
 0x494   : > { %v1234_v60 = vpop.permute.xlu1 %1233 }
 0x495   : > { %v1239_v63 = vsel %vm1045_vm3, %v1234_v60, 0 }
 0x497   : > { %v2227_v38 = vpop.eup %2226 }
 0x498   : > { %v1024_v53 = vmul.f32 %v2227_v38, %v2211_v16  ;;  %v2194_v38 = vld [vmem:[#allocation5] sm:$0xff]  }
 0x49a   : > { %v1032_v54 = vpack.c.bf16 %v1024_v53, %v1024_v53 }
 0x49b   : > { %v2229_v55 = vpop.eup %2228 }
 0x49c   : > { %v1025_v57 = vmul.f32 %v2229_v55, %v2213_v17  ;;  %2014 = vmatmul.mubr.msk.bf16.vlgmr.msra.gmra.mrb[12].mxu1 %vm515_vm2, %v1032_v54 }
 0x49d   : > { %2024 = vmatpush3.bf16.msra.mxu1 %v1143_v56  ;;  %2025 = vmatprep.mubr.msk.bf16.mxu1 %vm2412_vm1, %v2411_v7  ;;  %v2195_v56 = vld [vmem:[#allocation5 + $0x8] sm:$0xff]  }
 0x49e   : > { %v1033_v58 = vpack.c.bf16 %v1025_v57, %v1025_v57  ;;  %2035 = vmatprep.subr.bf16.mxu1 %v2411_v7 }
 0x4a0   : > { %2020 = vmatmul.mubr.msk.bf16.vlgmr.msra.gmra.mrb[24].mxu0 %vm515_vm2, %v1033_v58 }
 0x4a1   : > { %2030 = vmatpush3.bf16.msra.mxu0 %v1191_v59  ;;  %2031 = vmatprep.mubr.msk.bf16.mxu0 %vm2412_vm1, %v2411_v7 }
 0x4a2   : > { %2041 = vmatprep.subr.bf16.mxu0 %v2411_v7 }
 0x4a7   : > { %1377 = vrot.lane.b32.xlu0 %v2710_v40, %s2417_s20 }
 0x4e5   : > { %v1000_v61 = vpop.xlane.xlu0 %999 }
 0x4e6   : > { %2230 = vrcp.f32 %v1000_v61 }
 0x4e9   : > { %v1003_v62 = vpop.xlane.xlu1 %1002  ;;  %v1282_v11 = vpop.permute.xlu0 %1281 }
 0x4ea   : > { %2232 = vrcp.f32 %v1003_v62  ;;  %v1287_v12 = vsel %vm1045_vm3, %v1282_v11, 0 }
 0x4f0   : > { %v2231_v2 = vpop.eup %2230 }
 0x4f1   : > { %v1026_v3 = vmul.f32 %v2231_v2, %v2803_v24  ;;  %v1009_v4 = vpop.xlane.xlu1 %1008 }
 0x4f2   : > { %2234 = vrcp.f32 %v1009_v4 }
 0x4f3   : > { %v1034_v5 = vpack.c.bf16 %v1026_v3, %v1026_v3 }
 0x4f4   : > { %v2233_v8 = vpop.eup %2232 }
 0x4f5   : > { %v1027_v9 = vmul.f32 %v2233_v8, %v2807_v33  ;;  %2026 = vmatmul.mubr.msk.bf16.vlgmr.msra.gmra.mrb[16].mxu1 %vm515_vm2, %v1034_v5 }
 0x4f6   : > { %2036 = vmatpush3.bf16.msra.mxu1 %v1239_v63  ;;  %2037 = vmatprep.mubr.msk.bf16.mxu1 %vm2412_vm1, %v2411_v7 }
 0x4f7   : > { %v1035_v40 = vpack.c.bf16 %v1027_v9, %v1027_v9  ;;  %2047 = vmatprep.subr.bf16.mxu1 %v2411_v7 }
 0x4f9   : > { %2032 = vmatmul.mubr.msk.bf16.vlgmr.msra.gmra.mrb[28].mxu0 %vm515_vm2, %v1035_v40  ;;  %v1015_v10 = vpop.xlane.xlu1 %1014 }
 0x4fa   : > { %2042 = vmatpush3.bf16.msra.mxu0 %v1287_v12  ;;  %2043 = vmatprep.mubr.msk.bf16.mxu0 %vm2412_vm1, %v2411_v7  ;;  %2236 = vrcp.f32 %v1015_v10 }
 0x4fb   : > { %2053 = vmatprep.subr.bf16.mxu0 %v2411_v7 }
 0x4fc   : > { %v2235_v13 = vpop.eup %2234 }
 0x4fd   : > { %v1029_v14 = vmul.f32 %v2235_v13, %v2811_v31  ;;  %v1330_v22 = vpop.permute.xlu1 %1329 }
 0x4fe   : > { %v1335_v26 = vsel %vm1045_vm3, %v1330_v22, 0 }
 0x4ff   : > { %v1037_v16 = vpack.c.bf16 %v1029_v14, %v1029_v14 }
 0x501   : > { %2044 = vmatmul.mubr.msk.bf16.vlgmr.msra.gmra.mrb[32].mxu0 %vm515_vm2, %v1037_v16 }
 0x502   : > { %2055 = vmatprep.mubr.msk.bf16.mxu0 %vm2412_vm1, %v2411_v7 }
 0x504   : > { %v2237_v18 = vpop.eup %2236 }
 0x505   : > { %v1031_v34 = vmul.f32 %v2237_v18, %v2815_v35 }
 0x507   : > { %v1039_v20 = vpack.c.bf16 %v1031_v34, %v1031_v34 }
 0x51a   : > { %v1006_v17 = vpop.xlane.xlu0 %1005 }
 0x51b   : > { %2238 = vrcp.f32 %v1006_v17 }
 0x51e   : > { %v1012_v30 = vpop.xlane.xlu0 %1011 }
 0x51f   : > { %2240 = vrcp.f32 %v1012_v30 }
 0x522   : > { %v1378_v6 = vpop.permute.xlu0 %1377 }
 0x523   : > { %v1383_v19 = vsel %vm1045_vm3, %v1378_v6, 0 }
 0x524   : > { %2054 = vmatpush3.bf16.msra.mxu0 %v1383_v19 }
 0x525   : > { %v2239_v15 = vpop.eup %2238  ;;  %2067 = vmatprep.subr.bf16.mxu0 %v2411_v7 }
 0x526   : > { %v1028_v21 = vmul.f32 %v2239_v15, %v2825_v48 }
 0x527   : > { %2056 = vmatmul.mubr.msk.bf16.vlgmr.msra.gmra.mrb[36].mxu0 %vm515_vm2, %v1039_v20 }
 0x528   : > { %v1036_v24 = vpack.c.bf16 %v1028_v21, %v1028_v21  ;;  %2071 = vmatprep.mubr.msk.bf16.mxu0 %vm2412_vm1, %v2411_v7 }
 0x529   : > { %v2241_v25 = vpop.eup %2240 }
 0x52a   : > { %2038 = vmatmul.mubr.msk.bf16.vlgmr.msra.gmra.mrb[20].mxu1 %vm515_vm2, %v1036_v24  ;;  %v1030_v33 = vmul.f32 %v2241_v25, %v2829_v51 }
 0x52b   : > { %2048 = vmatpush3.bf16.msra.mxu1 %v1335_v26  ;;  %2049 = vmatprep.mubr.msk.bf16.mxu1 %vm2412_vm1, %v2411_v7 }
 0x52c   : > { %2059 = vmatprep.subr.bf16.mxu1 %v2411_v7  ;;  %v1038_v27 = vpack.c.bf16 %v1030_v33, %v1030_v33 }
 0x532   : > { %2050 = vmatmul.mubr.msk.bf16.vlgmr.msra.gmra.mrb[24].mxu1 %vm515_vm2, %v1038_v27 }
 0x533   : > { %2063 = vmatprep.mubr.msk.bf16.mxu1 %vm2412_vm1, %v2411_v7  ;;  %2060 = vmatpush3.bf16.msra.mxu1 %v2194_v38 }
 0x534   : > { %2061 = vmatprep.subr.bf16.mxu1 %v2411_v7 }
 0x537   : > { %2062 = vmatpush3.bf16.msra.mxu1 %v2195_v56 }
 0x538   : > { %2075 = vmatprep.subr.bf16.mxu1 %v2411_v7 }
 0x56f   : > { %v1083_v23 = vpop.f32.mrb[12].mxu1 }
 0x570   : > { %v2015_v28 = vpop.f32.mrb[13].mxu1 }
 0x571   : > { %v1086_v29 = vpop.f32.mrb[14].mxu1 }
 0x572   : > { %v2016_v31 = vpop.f32.mrb[15].mxu1  ;;  %v2197_v29 = vld [vmem:[#allocation7 + $0x8] sm:$0xff]  }
 0x573   : > { %v1131_v32 = vpop.f32.mrb[24].mxu0  ;;  %v2199_v31 = vld [vmem:[%s2999_s8 + $0x8] sm:$0xff]  }
 0x574   : > { %v2021_v35 = vpop.f32.mrb[25].mxu0 }
 0x575   : > { %v1134_v37 = vpop.f32.mrb[26].mxu0  ;;  %v2201_v35 = vld [vmem:[%s2999_s8 + $0x18] sm:$0xff]  }
 0x576   : > { %v2022_v39 = vpop.f32.mrb[27].mxu0  ;;  %v2202_v37 = vld [vmem:[%s2999_s8 + $0x20] sm:$0xff]  }
 0x577   : > { %v2203_v39 = vld [vmem:[%s2999_s8 + $0x28] sm:$0xff]  }
 0x5c8   : > { %v1179_v41 = vpop.f32.mrb[16].mxu1 }
 0x5c9   : > { %v2027_v42 = vpop.f32.mrb[17].mxu1 }
 0x5ca   : > { %v1182_v43 = vpop.f32.mrb[18].mxu1 }
 0x5cb   : > { %v2028_v45 = vpop.f32.mrb[19].mxu1 }
 0x5cc   : > { %v1227_v46 = vpop.f32.mrb[28].mxu0 }
 0x5cd   : > { %v2177_v47 = vpack.i.bf16 %v1227_v46, %v1179_v41  ;;  %v2033_v48 = vpop.f32.mrb[29].mxu0 }
 0x5ce   : > { %v1230_v49 = vpop.f32.mrb[30].mxu0 }
 0x5cf   : > { %2178 = vrot.lane.b32.xlu1 %v2177_v47, %s2418_s14  ;;  %v2034_v50 = vpop.f32.mrb[31].mxu0 }
 0x5d4   : > { %v1323_v36 = vpop.f32.mrb[32].mxu0 }
 0x5d5   : > { %v2045_v51 = vpop.f32.mrb[33].mxu0 }
 0x5d6   : > { %v1326_v44 = vpop.f32.mrb[34].mxu0 }
 0x5d7   : > { %v2046_v52 = vpop.f32.mrb[35].mxu0 }
 0x5fa   : > { %v1419_v53 = vpop.f32.mrb[36].mxu0 }
 0x5fb   : > { %v2057_v54 = vpop.f32.mrb[37].mxu0 }
 0x5fc   : > { %v1422_v55 = vpop.f32.mrb[38].mxu0  ;;  %v2205_v54 = vld [vmem:[%s2999_s8 + $0x38] sm:$0xff]  }
 0x5fd   : > { %v1275_v57 = vpop.f32.mrb[20].mxu1  ;;  %v2058_v58 = vpop.f32.mrb[39].mxu0 }
 0x5fe   : > { %v2182_v59 = vpack.i.bf16 %v1323_v36, %v1275_v57  ;;  %v2039_v60 = vpop.f32.mrb[21].mxu1  ;;  %v1884_v36 = vld [vmem:[%s2997_s6] ss:$0 sm:$0xff] }
 0x5ff   : > { %v1278_v61 = vpop.f32.mrb[22].mxu1 }
 0x600   : > { %v2040_v62 = vpop.f32.mrb[23].mxu1  ;;  %2183 = vrot.lane.b32.xlu0 %v2182_v59, %s2419_s16  ;;  %s1732_s16 = sshll.u32 %s395_s17, 4  ;;  %s2938_s16 = int_to_ptr.vmem [resolvable:$true] %s1732_s16 }
 0x601   : > { %s2332_s25 = scalar_lea.vmem %s2938_s16, 256  ;;  %p2339_p9 = scmp.lt.s32.totalorder %s2938_s16, %s2337_s22 }
 0x602   : > { %p2333_p0 = scmp.ne.s32.totalorder %s2938_s16, %s2332_s25  ;;  %p2340_p12 = scmp.lt.s32.totalorder %s2338_s28, %s2332_s25 }
 0x604   : > { %p2334_p3 = pnand %p2333_p0, %p3016_p1  ;;  %p2341_p2 = por %p2340_p12, %p2339_p9 }
 0x605   : > { %v1371_v2 = vpop.f32.mrb[24].mxu1 }
 0x606   : > { %v2187_v3 = vpack.i.bf16 %v1419_v53, %v1371_v2  ;;  %v2051_v4 = vpop.f32.mrb[25].mxu1  ;;  %v2204_v53 = vld [vmem:[%s2999_s8 + $0x30] sm:$0xff]   ;;  %p2335_p7 = pneg %p2334_p3 }
 0x607   : > { %v1374_v5 = vpop.f32.mrb[26].mxu1 }
 0x608   : > { %v2052_v8 = vpop.f32.mrb[27].mxu1  ;;  %2188 = vrot.lane.b32.xlu1 %v2187_v3, %s2420_s23  ;;  %s1904_s23 = sshll.u32 %s2494_s13, 8  ;;  %s1719_s13 = scalar_lea.sflag [#allocation4], %s2645_s19 }
 0x609   : > { %s2945_s21 = scalar_lea.hbm %s3000_s9, %s1904_s23  ;;  %p2342_p13 = pnand %p2341_p2, %p2335_p7 }
 0x641   : > { %v2179_v63 = vpop.permute.xlu1 %2178 }
 0x642   : > { %v2181_v11 = vunpack.i.h.bf16 %v2179_v63  ;;  %v2180_v40 = vunpack.i.l.bf16 %v2179_v63 }
 0x644   : > { %v1450_v16 = vsel %vm515_vm2, %v1131_v32, %v2181_v11  ;;  %v1449_v10 = vsel %vm515_vm2, %v1083_v23, %v2180_v40  ;;  %v2200_v32 = vld [vmem:[%s2999_s8 + $0x10] sm:$0xff]  }
 0x672   : > { %v2184_v9 = vpop.permute.xlu0 %2183 }
 0x673   : > { %v2186_v12 = vunpack.i.h.bf16 %v2184_v9  ;;  %v2185_v13 = vunpack.i.l.bf16 %v2184_v9 }
 0x675   : > { %v1453_v30 = vsel %vm1451_vm4, %v1450_v16, %v2186_v12  ;;  %v1452_v34 = vsel %vm1451_vm4, %v1449_v10, %v2185_v13 }
 0x67a   : > { %v2189_v14 = vpop.permute.xlu1 %2188 }
 0x67b   : > { %v2191_v17 = vunpack.i.h.bf16 %v2189_v14  ;;  %v2190_v18 = vunpack.i.l.bf16 %v2189_v14 }
 0x67d   : > { %v1456_v6 = vsel %vm1454_vm5, %v1453_v30, %v2191_v17  ;;  %v1455_v19 = vsel %vm1454_vm5, %v1452_v34, %v2190_v18 }
 0x67e   : > { %v1457_v15 = vpack.c.bf16 %v1456_v6, %v1455_v19 }
 0x680   : > { %2064 = vmatmul.mubr.msk.bf16.vlgmr.msra.gmra.mrb[28].mxu1 %vm409_vm0, %v1457_v15 }
 0x681   : > { %2091 = vmatprep.mubr.msk.bf16.mxu1 %vm2412_vm1, %v2411_v7 }
 0x753   : > { %v1511_v20 = vpop.f32.mrb[28].mxu1 }
 0x754   : > { %v2886_v21 = vadd.f32 %v1511_v20, %v2663_v0  ;;  %v2065_v22 = vpop.f32.mrb[29].mxu1  ;;  %v2196_v0 = vld [vmem:[#allocation7] sm:$0xff]  }
 0x755   : > { %v1514_v24 = vpop.f32.mrb[30].mxu1  ;;  %2068 = vmatpush3.bf16.msra.mxu0 %v2196_v0 }
 0x756   : > { %v2889_v25 = vadd.f32 %v1514_v24, %v2665_v1  ;;  %v2066_v26 = vpop.f32.mrb[31].mxu1  ;;  %v1520_v33 = vmul.f32 %v2886_v21, %v2886_v21  ;;  %2069 = vmatprep.subr.bf16.mxu0 %v2411_v7  ;;  %v2198_v1 = vld [vmem:[%s2999_s8] sm:$0xff]  }
 0x757   : > { %2076 = vmatpush3.bf16.msra.mxu1 %v2198_v1 }
 0x758   : > { %v1522_v27 = vsel %vm409_vm0, %v1520_v33, 0.0  ;;  %v1521_v23 = vmul.f32 %v2889_v25, %v2889_v25  ;;  %2077 = vmatprep.subr.bf16.mxu1 %v2411_v7 }
 0x759   : > { %1523 = vadd.xlane.f32.xlu0 %v1522_v27  ;;  %2070 = vmatpush3.bf16.msra.mxu0 %v2197_v29 }
 0x75a   : > { %v1525_v28 = vsel %vm409_vm0, %v1521_v23, 0.0 }
 0x75b   : > { %1526 = vadd.xlane.f32.xlu1 %v1525_v28  ;;  %2078 = vmatpush3.bf16.msra.mxu1 %v2199_v31 }
 0x75c   : > { %2079 = vmatprep.subr.bf16.mxu1 %v2411_v7 }
 0x75f   : > { %2080 = vmatpush3.bf16.msra.mxu1 %v2200_v32 }
 0x760   : > { %2081 = vmatprep.subr.bf16.mxu1 %v2411_v7 }
 0x763   : > { %2082 = vmatpush3.bf16.msra.mxu1 %v2201_v35 }
 0x764   : > { %2083 = vmatprep.subr.bf16.mxu1 %v2411_v7 }
 0x767   : > { %2084 = vmatpush3.bf16.msra.mxu1 %v2202_v37 }
 0x768   : > { %2085 = vmatprep.subr.bf16.mxu1 %v2411_v7 }
 0x76b   : > { %2086 = vmatpush3.bf16.msra.mxu1 %v2203_v39 }
 0x76c   : > { %2087 = vmatprep.subr.bf16.mxu1 %v2411_v7 }
 0x76f   : > { %2088 = vmatpush3.bf16.msra.mxu1 %v2204_v53 }
 0x770   : > { %2089 = vmatprep.subr.bf16.mxu1 %v2411_v7 }
 0x773   : > { %2090 = vmatpush3.bf16.msra.mxu1 %v2205_v54 }
 0x7e6   : > { %v1524_v41 = vpop.xlane.xlu0 %1523 }
 0x7e7   : > { %v1528_v42 = vmul.f32 0.03125, %v1524_v41 }
 0x7e8   : > { %v1527_v43 = vpop.xlane.xlu1 %1526 }
 0x7e9   : > { %v1530_v45 = vadd.f32 1e-06, %v1528_v42  ;;  %v1529_v46 = vmul.f32 0.03125, %v1527_v43 }
 0x7eb   : > { %2242 = vrsqrt.f32 %v1530_v45  ;;  %v1531_v47 = vadd.f32 1e-06, %v1529_v46 }
 0x7ed   : > { %2244 = vrsqrt.f32 %v1531_v47 }
 0x7f5   : > { %v2243_v48 = vpop.eup %2242 }
 0x7f6   : > { %v1534_v49 = vmul.f32 %v2243_v48, %v2886_v21 }
 0x7f7   : > { %v2245_v50 = vpop.eup %2244 }
 0x7f8   : > { %v1535_v51 = vmul.f32 %v2245_v50, %v2889_v25  ;;  %v1543_v44 = vmul.f32 %v1884_v36, %v1534_v49 }
 0x7fa   : > { %v1544_v52 = vmul.f32 %v1884_v36, %v1535_v51 }
 0x7fc   : > { %v1545_v38 = vpack.c.bf16 %v1544_v52, %v1543_v44 }
 0x7fe   : > { %2072 = vmatmul.mubr.msk.bf16.vlgmr.msra.gmra.mrb[40].mxu0 %vm409_vm0, %v1545_v38 }
 0x8d1   : > { %v1599_v55 = vpop.f32.mrb[40].mxu0 }
 0x8d2   : > { %v2073_v56 = vpop.f32.mrb[41].mxu0  ;;  %v1606_v58 = vmax.f32 %v1599_v55, 0.0 }
 0x8d3   : > { %v1602_v57 = vpop.f32.mrb[42].mxu0 }
 0x8d4   : > { %v1607_v59 = vmax.f32 %v1602_v57, 0.0  ;;  %v2074_v60 = vpop.f32.mrb[43].mxu0 }
 0x8d6   : > { %v1608_v61 = vpack.c.bf16 %v1607_v59, %v1606_v58 }
 0x8d8   : > { %2092 = vmatmul.mubr.bf16.vlgmr.msra.gmra.mrb[32].mxu1 %v1608_v61 }
 0x9ab   : > { %v1707_v62 = vpop.f32.mrb[32].mxu1 }
 0x9ac   : > { %v1714_v7 = vadd.f32 %v1707_v62, %v2886_v21  ;;  %v2093_v2 = vpop.f32.mrb[33].mxu1 }
 0x9ad   : > { %v1710_v3 = vpop.f32.mrb[34].mxu1 }
 0x9ae   : > { %1716 = vst.msk [vmem:[%s395_s17] sm:$0xff] %vm409_vm0, %v1714_v7  ;;  %v1715_v4 = vadd.f32 %v1710_v3, %v2889_v25  ;;  %v2094_v5 = vpop.f32.mrb[35].mxu1 }
 0x9b0   : > { %1717 = vst.msk [vmem:[%s395_s17 + $0x8] sm:$0xff] %vm409_vm0, %v1715_v4 }
 0x9b1   : > { %2345 = shalt.err (!%p2342_p13)
}
 0x9b2   : > { %s2346_s29 = scalar_lea.hbm %s2945_s21, 256  ;;  %s2350_s20 = scalar_lea.hbm %s3000_s9, 512 }
 0x9b3   : > { %p2347_p6 = scmp.ne.s32.totalorder %s2945_s21, %s2346_s29  ;;  %p2351_p5 = scmp.lt.u32.totalorder %s2945_s21, %s3000_s9 }
 0x9b4   : > { %p2352_p8 = scmp.lt.u32.totalorder %s2350_s20, %s2346_s29  ;;  %p2354_p0 = scmp.lt.u32.totalorder %s2346_s29, %s2945_s21 }
 0x9b5   : > { %p2348_p10 = pnand %p2347_p6, %p3016_p1 }
 0x9b6   : > { %p2353_p11 = por %p2352_p8, %p2351_p5 }
 0x9b7   : > { %p2349_p4 = pneg %p2348_p10 }
 0x9b8   : > { %p2355_p3 = por %p2354_p0, %p2353_p11 }
 0x9ba   : > { %p2356_p7 = pnand %p2355_p3, %p2349_p4 }
 0x9bc   : > { %2359 = shalt.err (!%p2356_p7)
}
 0x9bd   : > { %s2422_s25 = smov 128  }
 0x9be   : > { %2105 = dma.vmem_to_hbm [thread:$0]  (%p3016_p1), %s2938_s16, 256, %s2945_s21, %s1719_s13, %s2422_s25, %s2422_s25, %s2418_s14  }
 0x9bf PF: > { %s3017_s22 = sld [smem:[#allocation12_spill]]  ;;  %s1747_s28 = sand.u32 1, %s2390_s30  }
 0x9c0   : > { %p3019_p12 = scmp.ge.s32.totalorder %s2402_s12, 2  ;;  %s1748_s29 = scalar_lea.sflag [#allocation4], %s1747_s28 }
 0x9c5   : > { %p3018_p9 = scmp.ne.s32.totalorder %s3017_s22, 0 }
 0x9c7   : > { %p2119_p2 = pnand %p3019_p12, %p3018_p9 }
 0x9c9   : > { %2385 = dma.done.wait (!%p2119_p2), %s1748_s29, 256  }
 0x9ca   : > { %2387 = vsyncadd (!%p2119_p2), %s1748_s29, 4294967040  ;;  %p23_p13 = scmp.ge.s32.totalorder %s2583_s24, 4   ;;  %s3020_s30 = smov %s2394_s10 }
 0x9cb   : > { %s3021_s10 = smov %s2398_s11  ;;  %s3022_s11 = smov %s2599_s27 }
 0x9cc   : > { %s3023_s12 = smov %s2583_s24  ;;  %25 = sbr.rel (!%p23_p13) target bundleno = 6 (0x6), region = 112 }
 0x9d3   :  { %1753 = vsyncpa [#allocation3], 1 }
 0x9d4   :  { %1755 = vsyncpa [#allocation3 + $0x1], 1 }
 0x9d5   :  { %1756 = vsyncpa [#allocation6], 1 }
 0x9d6   :  { %1757 = vsyncpa [#allocation4], 1 }
 0x9d7   :  { %1759 = vsyncpa [#allocation4 + $0x1], 1 }

</bundles_post_ra>
